<compile_context>
chip_gen: v7x
topology: tpu7x:2x2x1
jax: 0.10.0
libtpu: 0.0.40
codegen_flags: <defaults>
</compile_context>

<pallas_src>
import jax
import jax.numpy as jnp
from jax.experimental import pallas as pl
from jax.experimental.pallas import tpu as pltpu

INPUT_SIZE = 4
HIDDEN_SIZE = 32
NUM_LAYERS = 2
OUTPUT_SIZE = 1


def lstm_kernel(x_ref, w0_ref, b0_ref, w1_ref, b1_ref, w_d_ref, b_d_ref, out_ref):
    T, B, _ = x_ref.shape
    H = HIDDEN_SIZE

    # Hoist weight / bias loads and the g-gate lane mask out of the time loop.
    w0 = w0_ref[...]          # (I+H, 4H)  -- [w_ih0; w_hh0]
    w1 = w1_ref[...]          # (2H,  4H)  -- [w_ih1; w_hh1]
    b0 = b0_ref[...]          # (1, 4H)    -- b_ih0 + b_hh0
    b1 = b1_ref[...]          # (1, 4H)
    lane = jax.lax.broadcasted_iota(jnp.int32, (B, 4 * H), 1)
    g_mask = (lane >= 2 * H) & (lane < 3 * H)   # columns of the "g" (cell input) gate

    def cell(inp, h, c, w, b):
        # Single fused MXU matmul for input + recurrent contributions.
        gates = jnp.dot(jnp.concatenate([inp, h], axis=-1), w,
                        preferred_element_type=jnp.float32) + b
        # Two full 128-lane EUP pushes over the whole gate slab, then a VPU select
        # of the tanh'd g columns; slice per-gate only after activation.
        act = jnp.where(g_mask, jnp.tanh(gates), jax.nn.sigmoid(gates))
        i = act[:, 0 * H:1 * H]
        f = act[:, 1 * H:2 * H]
        g = act[:, 2 * H:3 * H]
        o = act[:, 3 * H:4 * H]
        c_new = f * c + i * g
        h_new = o * jnp.tanh(c_new)
        return h_new, c_new

    zeros = jnp.zeros((B, H), jnp.float32)
    h0 = c0 = h1 = c1 = zeros                # zero initial state (LSTM(x, None))

    # Fully unrolled time loop (T = 8): one basic block, full LLO visibility,
    # all indices static.
    h1_hist = []
    for t in range(T):
        x_t = x_ref[t]                        # (B, I)
        h0, c0 = cell(x_t, h0, c0, w0, b0)    # layer 0
        h1, c1 = cell(h0, h1, c1, w1, b1)     # layer 1
        h1_hist.append(h1)

    # Batched dense head: one matmul + one output store for the whole sequence.
    hs = jnp.concatenate(h1_hist, axis=0)     # (T*B, H), row index = t*B + b
    out = (jnp.dot(hs, w_d_ref[...], preferred_element_type=jnp.float32)
           + b_d_ref[...])
    out_ref[...] = out.astype(out_ref.dtype)


def mylstm_forward(x, params):
    """Pallas implementation of Mylstm.forward."""
    seq_len = x.shape[0]                                   # x.size(0)
    x_bt = x.reshape(-1, seq_len, INPUT_SIZE).astype(jnp.float32)  # view(-1, T, I)
    batch = x_bt.shape[0]
    x_tm = jnp.transpose(x_bt, (1, 0, 2))                  # (T, B, I) time-major

    w_ih0, w_hh0, b0, w_ih1, w_hh1, b1, w_d, b_d = params
    # Fuse input + recurrent weights per layer (one matmul per layer per step).
    w0 = jnp.concatenate([w_ih0, w_hh0], axis=0)           # (I+H, 4H)
    w1 = jnp.concatenate([w_ih1, w_hh1], axis=0)           # (2H, 4H)

    T = seq_len
    vmem = lambda: pl.BlockSpec(memory_space=pltpu.MemorySpace.VMEM)

    out_flat = pl.pallas_call(
        lstm_kernel,
        out_shape=jax.ShapeDtypeStruct((T * batch, OUTPUT_SIZE), jnp.float32),
        in_specs=[vmem() for _ in range(7)],
        out_specs=vmem(),
    )(x_tm, w0, b0, w1, b1, w_d, b_d)

    out_tm = out_flat.reshape(T, batch, OUTPUT_SIZE)       # rows were (t, b)-ordered
    out_bt = jnp.transpose(out_tm, (1, 0, 2))              # (B, T, O)
    return out_bt.reshape(-1)                              # Out.view(-1)


def reference_forward(x, params):
    """Pure-JAX reference (unfused weights, per-gate activations) for validation."""
    seq_len = x.shape[0]
    x_bt = x.reshape(-1, seq_len, INPUT_SIZE).astype(jnp.float32)
    batch = x_bt.shape[0]
    x_tm = jnp.transpose(x_bt, (1, 0, 2))
    w_ih0, w_hh0, b0, w_ih1, w_hh1, b1, w_d, b_d = params
    H = HIDDEN_SIZE

    def cell(x_t, h, c, w_ih, w_hh, b):
        gates = jnp.dot(x_t, w_ih) + jnp.dot(h, w_hh) + b
        i = jax.nn.sigmoid(gates[:, 0 * H:1 * H])
        f = jax.nn.sigmoid(gates[:, 1 * H:2 * H])
        g = jnp.tanh(gates[:, 2 * H:3 * H])
        o = jax.nn.sigmoid(gates[:, 3 * H:4 * H])
        c_new = f * c + i * g
        h_new = o * jnp.tanh(c_new)
        return h_new, c_new

    def step(carry, x_t):
        h0, c0, h1, c1 = carry
        h0, c0 = cell(x_t, h0, c0, w_ih0, w_hh0, b0)
        h1, c1 = cell(h0, h1, c1, w_ih1, w_hh1, b1)
        y = jnp.dot(h1, w_d) + b_d
        return (h0, c0, h1, c1), y

    zeros = jnp.zeros((batch, HIDDEN_SIZE), jnp.float32)
    _, ys = jax.lax.scan(step, (zeros, zeros, zeros, zeros), x_tm)  # (T, B, O)
    return jnp.transpose(ys, (1, 0, 2)).reshape(-1)


def init_params(key):
    scale = 1.0 / jnp.sqrt(jnp.float32(HIDDEN_SIZE))
    ks = jax.random.split(key, 8)

    def u(k, shape):
        return jax.random.uniform(k, shape, jnp.float32, -scale, scale)

    w_ih0 = u(ks[0], (INPUT_SIZE, 4 * HIDDEN_SIZE))     # layer 0 input weights (transposed)
    w_hh0 = u(ks[1], (HIDDEN_SIZE, 4 * HIDDEN_SIZE))
    b0 = u(ks[2], (1, 4 * HIDDEN_SIZE))                 # b_ih + b_hh pre-summed
    w_ih1 = u(ks[3], (HIDDEN_SIZE, 4 * HIDDEN_SIZE))    # layer 1 input = layer 0 hidden
    w_hh1 = u(ks[4], (HIDDEN_SIZE, 4 * HIDDEN_SIZE))
    b1 = u(ks[5], (1, 4 * HIDDEN_SIZE))
    w_d = u(ks[6], (HIDDEN_SIZE, OUTPUT_SIZE))          # dense weight (transposed)
    b_d = u(ks[7], (1, OUTPUT_SIZE))
    return (w_ih0, w_hh0, b0, w_ih1, w_hh1, b1, w_d, b_d)


if __name__ == "__main__":
    key = jax.random.PRNGKey(0)
    k_x, k_p = jax.random.split(key)

    # x.size(0) = seq_len = 8; batch = 2 (small shapes consistent with the module)
    x = jax.random.normal(k_x, (8, 2, INPUT_SIZE), dtype=jnp.float32)
    params = init_params(k_p)

    out = jax.block_until_ready(mylstm_forward(x, params))
    ref = jax.block_until_ready(reference_forward(x, params))

    assert out.shape == ref.shape == (2 * 8 * OUTPUT_SIZE,)
    assert jnp.allclose(out, ref, rtol=1e-5, atol=1e-5), (
        f"max abs diff = {jnp.max(jnp.abs(out - ref))}")

    print("KERNEL_OK")
</pallas_src>

<mosaic_0001>
module attributes {stable_mosaic.version = 11 : i64} {
  func.func @lstm_kernel(%arg0: memref<8x2x4xf32, #tpu.memory_space<vmem>>, %arg1: memref<36x128xf32, #tpu.memory_space<vmem>>, %arg2: memref<1x128xf32, #tpu.memory_space<vmem>>, %arg3: memref<64x128xf32, #tpu.memory_space<vmem>>, %arg4: memref<1x128xf32, #tpu.memory_space<vmem>>, %arg5: memref<32x1xf32, #tpu.memory_space<vmem>>, %arg6: memref<1x1xf32, #tpu.memory_space<vmem>>, %arg7: memref<16x1xf32, #tpu.memory_space<vmem>>) attributes {dimension_semantics = [], scalar_prefetch = 0 : i64, scratch_operands = 0 : i64, tpu.core_type = #tpu.core_type<tc>} {
    %c0 = arith.constant 0 : index
    %c0_0 = arith.constant 0 : index
    %0 = vector.load %arg1[%c0, %c0_0] : memref<36x128xf32, #tpu.memory_space<vmem>>, vector<36x128xf32>
    %c0_1 = arith.constant 0 : index
    %c0_2 = arith.constant 0 : index
    %1 = vector.load %arg3[%c0_1, %c0_2] : memref<64x128xf32, #tpu.memory_space<vmem>>, vector<64x128xf32>
    %c0_3 = arith.constant 0 : index
    %c0_4 = arith.constant 0 : index
    %2 = vector.load %arg2[%c0_3, %c0_4] : memref<1x128xf32, #tpu.memory_space<vmem>>, vector<1x128xf32>
    %c0_5 = arith.constant 0 : index
    %c0_6 = arith.constant 0 : index
    %3 = vector.load %arg4[%c0_5, %c0_6] : memref<1x128xf32, #tpu.memory_space<vmem>>, vector<1x128xf32>
    %4 = tpu.iota {dimensions = array<i32: 1>} : vector<2x128xi32>
    %c64_i32 = arith.constant 64 : i32
    %5 = vector.broadcast %c64_i32 : i32 to vector<2x128xi32>
    %6 = arith.cmpi sge, %4, %5 : vector<2x128xi32>
    %c96_i32 = arith.constant 96 : i32
    %7 = vector.broadcast %c96_i32 : i32 to vector<2x128xi32>
    %8 = arith.cmpi slt, %4, %7 : vector<2x128xi32>
    %9 = arith.andi %6, %8 : vector<2x128xi1>
    %cst = arith.constant 0.000000e+00 : f32
    %10 = vector.broadcast %cst : f32 to vector<2x32xf32>
    %c0_7 = arith.constant 0 : index
    %c0_8 = arith.constant 0 : index
    %c0_9 = arith.constant 0 : index
    %11 = vector.load %arg0[%c0_7, %c0_8, %c0_9] : memref<8x2x4xf32, #tpu.memory_space<vmem>>, vector<1x2x4xf32>
    %12 = vector.shape_cast %11 : vector<1x2x4xf32> to vector<2x4xf32>
    %13 = tpu.concatenate %12, %10 in 1 : vector<2x4xf32>, vector<2x32xf32> -> vector<2x36xf32>
    %cst_10 = arith.constant dense<0.000000e+00> : vector<2x128xf32>
    %14 = tpu.matmul %13, %0, %cst_10 {dimension_numbers = #tpu.dot_dimension_numbers<[1], [0], [0], [1], [0, 0, 1, 1], [], []>} : vector<2x36xf32>, vector<36x128xf32>, vector<2x128xf32> -> vector<2x128xf32>
    %15 = vector.broadcast %2 : vector<1x128xf32> to vector<2x128xf32>
    %16 = arith.addf %14, %15 : vector<2x128xf32>
    %17 = math.tanh %16 : vector<2x128xf32>
    %18 = arith.negf %16 : vector<2x128xf32>
    %19 = math.exp %18 : vector<2x128xf32>
    %cst_11 = arith.constant 1.000000e+00 : f32
    %20 = vector.broadcast %cst_11 : f32 to vector<2x128xf32>
    %21 = arith.addf %20, %19 : vector<2x128xf32>
    %22 = arith.divf %20, %21 : vector<2x128xf32>
    %23 = arith.select %9, %17, %22 : vector<2x128xi1>, vector<2x128xf32>
    %24 = vector.extract_strided_slice %23 {offsets = [0, 0], sizes = [2, 32], strides = [1, 1]} : vector<2x128xf32> to vector<2x32xf32>
    %25 = vector.extract_strided_slice %23 {offsets = [0, 32], sizes = [2, 32], strides = [1, 1]} : vector<2x128xf32> to vector<2x32xf32>
    %26 = vector.extract_strided_slice %23 {offsets = [0, 64], sizes = [2, 32], strides = [1, 1]} : vector<2x128xf32> to vector<2x32xf32>
    %27 = vector.extract_strided_slice %23 {offsets = [0, 96], sizes = [2, 32], strides = [1, 1]} : vector<2x128xf32> to vector<2x32xf32>
    %28 = arith.mulf %25, %10 : vector<2x32xf32>
    %29 = arith.mulf %24, %26 : vector<2x32xf32>
    %30 = arith.addf %28, %29 : vector<2x32xf32>
    %31 = math.tanh %30 : vector<2x32xf32>
    %32 = arith.mulf %27, %31 : vector<2x32xf32>
    %33 = tpu.concatenate %32, %10 in 1 : vector<2x32xf32>, vector<2x32xf32> -> vector<2x64xf32>
    %cst_12 = arith.constant dense<0.000000e+00> : vector<2x128xf32>
    %34 = tpu.matmul %33, %1, %cst_12 {dimension_numbers = #tpu.dot_dimension_numbers<[1], [0], [0], [1], [0, 0, 1, 1], [], []>} : vector<2x64xf32>, vector<64x128xf32>, vector<2x128xf32> -> vector<2x128xf32>
    %35 = vector.broadcast %3 : vector<1x128xf32> to vector<2x128xf32>
    %36 = arith.addf %34, %35 : vector<2x128xf32>
    %37 = math.tanh %36 : vector<2x128xf32>
    %38 = arith.negf %36 : vector<2x128xf32>
    %39 = math.exp %38 : vector<2x128xf32>
    %cst_13 = arith.constant 1.000000e+00 : f32
    %40 = vector.broadcast %cst_13 : f32 to vector<2x128xf32>
    %41 = arith.addf %40, %39 : vector<2x128xf32>
    %42 = arith.divf %40, %41 : vector<2x128xf32>
    %43 = arith.select %9, %37, %42 : vector<2x128xi1>, vector<2x128xf32>
    %44 = vector.extract_strided_slice %43 {offsets = [0, 0], sizes = [2, 32], strides = [1, 1]} : vector<2x128xf32> to vector<2x32xf32>
    %45 = vector.extract_strided_slice %43 {offsets = [0, 32], sizes = [2, 32], strides = [1, 1]} : vector<2x128xf32> to vector<2x32xf32>
    %46 = vector.extract_strided_slice %43 {offsets = [0, 64], sizes = [2, 32], strides = [1, 1]} : vector<2x128xf32> to vector<2x32xf32>
    %47 = vector.extract_strided_slice %43 {offsets = [0, 96], sizes = [2, 32], strides = [1, 1]} : vector<2x128xf32> to vector<2x32xf32>
    %48 = arith.mulf %45, %10 : vector<2x32xf32>
    %49 = arith.mulf %44, %46 : vector<2x32xf32>
    %50 = arith.addf %48, %49 : vector<2x32xf32>
    %51 = math.tanh %50 : vector<2x32xf32>
    %52 = arith.mulf %47, %51 : vector<2x32xf32>
    %c1 = arith.constant 1 : index
    %c0_14 = arith.constant 0 : index
    %c0_15 = arith.constant 0 : index
    %53 = vector.load %arg0[%c1, %c0_14, %c0_15] : memref<8x2x4xf32, #tpu.memory_space<vmem>>, vector<1x2x4xf32>
    %54 = vector.shape_cast %53 : vector<1x2x4xf32> to vector<2x4xf32>
    %55 = tpu.concatenate %54, %32 in 1 : vector<2x4xf32>, vector<2x32xf32> -> vector<2x36xf32>
    %cst_16 = arith.constant dense<0.000000e+00> : vector<2x128xf32>
    %56 = tpu.matmul %55, %0, %cst_16 {dimension_numbers = #tpu.dot_dimension_numbers<[1], [0], [0], [1], [0, 0, 1, 1], [], []>} : vector<2x36xf32>, vector<36x128xf32>, vector<2x128xf32> -> vector<2x128xf32>
    %57 = vector.broadcast %2 : vector<1x128xf32> to vector<2x128xf32>
    %58 = arith.addf %56, %57 : vector<2x128xf32>
    %59 = math.tanh %58 : vector<2x128xf32>
    %60 = arith.negf %58 : vector<2x128xf32>
    %61 = math.exp %60 : vector<2x128xf32>
    %cst_17 = arith.constant 1.000000e+00 : f32
    %62 = vector.broadcast %cst_17 : f32 to vector<2x128xf32>
    %63 = arith.addf %62, %61 : vector<2x128xf32>
    %64 = arith.divf %62, %63 : vector<2x128xf32>
    %65 = arith.select %9, %59, %64 : vector<2x128xi1>, vector<2x128xf32>
    %66 = vector.extract_strided_slice %65 {offsets = [0, 0], sizes = [2, 32], strides = [1, 1]} : vector<2x128xf32> to vector<2x32xf32>
    %67 = vector.extract_strided_slice %65 {offsets = [0, 32], sizes = [2, 32], strides = [1, 1]} : vector<2x128xf32> to vector<2x32xf32>
    %68 = vector.extract_strided_slice %65 {offsets = [0, 64], sizes = [2, 32], strides = [1, 1]} : vector<2x128xf32> to vector<2x32xf32>
    %69 = vector.extract_strided_slice %65 {offsets = [0, 96], sizes = [2, 32], strides = [1, 1]} : vector<2x128xf32> to vector<2x32xf32>
    %70 = arith.mulf %67, %30 : vector<2x32xf32>
    %71 = arith.mulf %66, %68 : vector<2x32xf32>
    %72 = arith.addf %70, %71 : vector<2x32xf32>
    %73 = math.tanh %72 : vector<2x32xf32>
    %74 = arith.mulf %69, %73 : vector<2x32xf32>
    %75 = tpu.concatenate %74, %52 in 1 : vector<2x32xf32>, vector<2x32xf32> -> vector<2x64xf32>
    %cst_18 = arith.constant dense<0.000000e+00> : vector<2x128xf32>
    %76 = tpu.matmul %75, %1, %cst_18 {dimension_numbers = #tpu.dot_dimension_numbers<[1], [0], [0], [1], [0, 0, 1, 1], [], []>} : vector<2x64xf32>, vector<64x128xf32>, vector<2x128xf32> -> vector<2x128xf32>
    %77 = vector.broadcast %3 : vector<1x128xf32> to vector<2x128xf32>
    %78 = arith.addf %76, %77 : vector<2x128xf32>
    %79 = math.tanh %78 : vector<2x128xf32>
    %80 = arith.negf %78 : vector<2x128xf32>
    %81 = math.exp %80 : vector<2x128xf32>
    %cst_19 = arith.constant 1.000000e+00 : f32
    %82 = vector.broadcast %cst_19 : f32 to vector<2x128xf32>
    %83 = arith.addf %82, %81 : vector<2x128xf32>
    %84 = arith.divf %82, %83 : vector<2x128xf32>
    %85 = arith.select %9, %79, %84 : vector<2x128xi1>, vector<2x128xf32>
    %86 = vector.extract_strided_slice %85 {offsets = [0, 0], sizes = [2, 32], strides = [1, 1]} : vector<2x128xf32> to vector<2x32xf32>
    %87 = vector.extract_strided_slice %85 {offsets = [0, 32], sizes = [2, 32], strides = [1, 1]} : vector<2x128xf32> to vector<2x32xf32>
    %88 = vector.extract_strided_slice %85 {offsets = [0, 64], sizes = [2, 32], strides = [1, 1]} : vector<2x128xf32> to vector<2x32xf32>
    %89 = vector.extract_strided_slice %85 {offsets = [0, 96], sizes = [2, 32], strides = [1, 1]} : vector<2x128xf32> to vector<2x32xf32>
    %90 = arith.mulf %87, %50 : vector<2x32xf32>
    %91 = arith.mulf %86, %88 : vector<2x32xf32>
    %92 = arith.addf %90, %91 : vector<2x32xf32>
    %93 = math.tanh %92 : vector<2x32xf32>
    %94 = arith.mulf %89, %93 : vector<2x32xf32>
    %c2 = arith.constant 2 : index
    %c0_20 = arith.constant 0 : index
    %c0_21 = arith.constant 0 : index
    %95 = vector.load %arg0[%c2, %c0_20, %c0_21] : memref<8x2x4xf32, #tpu.memory_space<vmem>>, vector<1x2x4xf32>
    %96 = vector.shape_cast %95 : vector<1x2x4xf32> to vector<2x4xf32>
    %97 = tpu.concatenate %96, %74 in 1 : vector<2x4xf32>, vector<2x32xf32> -> vector<2x36xf32>
    %cst_22 = arith.constant dense<0.000000e+00> : vector<2x128xf32>
    %98 = tpu.matmul %97, %0, %cst_22 {dimension_numbers = #tpu.dot_dimension_numbers<[1], [0], [0], [1], [0, 0, 1, 1], [], []>} : vector<2x36xf32>, vector<36x128xf32>, vector<2x128xf32> -> vector<2x128xf32>
    %99 = vector.broadcast %2 : vector<1x128xf32> to vector<2x128xf32>
    %100 = arith.addf %98, %99 : vector<2x128xf32>
    %101 = math.tanh %100 : vector<2x128xf32>
    %102 = arith.negf %100 : vector<2x128xf32>
    %103 = math.exp %102 : vector<2x128xf32>
    %cst_23 = arith.constant 1.000000e+00 : f32
    %104 = vector.broadcast %cst_23 : f32 to vector<2x128xf32>
    %105 = arith.addf %104, %103 : vector<2x128xf32>
    %106 = arith.divf %104, %105 : vector<2x128xf32>
    %107 = arith.select %9, %101, %106 : vector<2x128xi1>, vector<2x128xf32>
    %108 = vector.extract_strided_slice %107 {offsets = [0, 0], sizes = [2, 32], strides = [1, 1]} : vector<2x128xf32> to vector<2x32xf32>
    %109 = vector.extract_strided_slice %107 {offsets = [0, 32], sizes = [2, 32], strides = [1, 1]} : vector<2x128xf32> to vector<2x32xf32>
    %110 = vector.extract_strided_slice %107 {offsets = [0, 64], sizes = [2, 32], strides = [1, 1]} : vector<2x128xf32> to vector<2x32xf32>
    %111 = vector.extract_strided_slice %107 {offsets = [0, 96], sizes = [2, 32], strides = [1, 1]} : vector<2x128xf32> to vector<2x32xf32>
    %112 = arith.mulf %109, %72 : vector<2x32xf32>
    %113 = arith.mulf %108, %110 : vector<2x32xf32>
    %114 = arith.addf %112, %113 : vector<2x32xf32>
    %115 = math.tanh %114 : vector<2x32xf32>
    %116 = arith.mulf %111, %115 : vector<2x32xf32>
    %117 = tpu.concatenate %116, %94 in 1 : vector<2x32xf32>, vector<2x32xf32> -> vector<2x64xf32>
    %cst_24 = arith.constant dense<0.000000e+00> : vector<2x128xf32>
    %118 = tpu.matmul %117, %1, %cst_24 {dimension_numbers = #tpu.dot_dimension_numbers<[1], [0], [0], [1], [0, 0, 1, 1], [], []>} : vector<2x64xf32>, vector<64x128xf32>, vector<2x128xf32> -> vector<2x128xf32>
    %119 = vector.broadcast %3 : vector<1x128xf32> to vector<2x128xf32>
    %120 = arith.addf %118, %119 : vector<2x128xf32>
    %121 = math.tanh %120 : vector<2x128xf32>
    %122 = arith.negf %120 : vector<2x128xf32>
    %123 = math.exp %122 : vector<2x128xf32>
    %cst_25 = arith.constant 1.000000e+00 : f32
    %124 = vector.broadcast %cst_25 : f32 to vector<2x128xf32>
    %125 = arith.addf %124, %123 : vector<2x128xf32>
    %126 = arith.divf %124, %125 : vector<2x128xf32>
    %127 = arith.select %9, %121, %126 : vector<2x128xi1>, vector<2x128xf32>
    %128 = vector.extract_strided_slice %127 {offsets = [0, 0], sizes = [2, 32], strides = [1, 1]} : vector<2x128xf32> to vector<2x32xf32>
    %129 = vector.extract_strided_slice %127 {offsets = [0, 32], sizes = [2, 32], strides = [1, 1]} : vector<2x128xf32> to vector<2x32xf32>
    %130 = vector.extract_strided_slice %127 {offsets = [0, 64], sizes = [2, 32], strides = [1, 1]} : vector<2x128xf32> to vector<2x32xf32>
    %131 = vector.extract_strided_slice %127 {offsets = [0, 96], sizes = [2, 32], strides = [1, 1]} : vector<2x128xf32> to vector<2x32xf32>
    %132 = arith.mulf %129, %92 : vector<2x32xf32>
    %133 = arith.mulf %128, %130 : vector<2x32xf32>
    %134 = arith.addf %132, %133 : vector<2x32xf32>
    %135 = math.tanh %134 : vector<2x32xf32>
    %136 = arith.mulf %131, %135 : vector<2x32xf32>
    %c3 = arith.constant 3 : index
    %c0_26 = arith.constant 0 : index
    %c0_27 = arith.constant 0 : index
    %137 = vector.load %arg0[%c3, %c0_26, %c0_27] : memref<8x2x4xf32, #tpu.memory_space<vmem>>, vector<1x2x4xf32>
    %138 = vector.shape_cast %137 : vector<1x2x4xf32> to vector<2x4xf32>
    %139 = tpu.concatenate %138, %116 in 1 : vector<2x4xf32>, vector<2x32xf32> -> vector<2x36xf32>
    %cst_28 = arith.constant dense<0.000000e+00> : vector<2x128xf32>
    %140 = tpu.matmul %139, %0, %cst_28 {dimension_numbers = #tpu.dot_dimension_numbers<[1], [0], [0], [1], [0, 0, 1, 1], [], []>} : vector<2x36xf32>, vector<36x128xf32>, vector<2x128xf32> -> vector<2x128xf32>
    %141 = vector.broadcast %2 : vector<1x128xf32> to vector<2x128xf32>
    %142 = arith.addf %140, %141 : vector<2x128xf32>
    %143 = math.tanh %142 : vector<2x128xf32>
    %144 = arith.negf %142 : vector<2x128xf32>
    %145 = math.exp %144 : vector<2x128xf32>
    %cst_29 = arith.constant 1.000000e+00 : f32
    %146 = vector.broadcast %cst_29 : f32 to vector<2x128xf32>
    %147 = arith.addf %146, %145 : vector<2x128xf32>
    %148 = arith.divf %146, %147 : vector<2x128xf32>
    %149 = arith.select %9, %143, %148 : vector<2x128xi1>, vector<2x128xf32>
    %150 = vector.extract_strided_slice %149 {offsets = [0, 0], sizes = [2, 32], strides = [1, 1]} : vector<2x128xf32> to vector<2x32xf32>
    %151 = vector.extract_strided_slice %149 {offsets = [0, 32], sizes = [2, 32], strides = [1, 1]} : vector<2x128xf32> to vector<2x32xf32>
    %152 = vector.extract_strided_slice %149 {offsets = [0, 64], sizes = [2, 32], strides = [1, 1]} : vector<2x128xf32> to vector<2x32xf32>
    %153 = vector.extract_strided_slice %149 {offsets = [0, 96], sizes = [2, 32], strides = [1, 1]} : vector<2x128xf32> to vector<2x32xf32>
    %154 = arith.mulf %151, %114 : vector<2x32xf32>
    %155 = arith.mulf %150, %152 : vector<2x32xf32>
    %156 = arith.addf %154, %155 : vector<2x32xf32>
    %157 = math.tanh %156 : vector<2x32xf32>
    %158 = arith.mulf %153, %157 : vector<2x32xf32>
    %159 = tpu.concatenate %158, %136 in 1 : vector<2x32xf32>, vector<2x32xf32> -> vector<2x64xf32>
    %cst_30 = arith.constant dense<0.000000e+00> : vector<2x128xf32>
    %160 = tpu.matmul %159, %1, %cst_30 {dimension_numbers = #tpu.dot_dimension_numbers<[1], [0], [0], [1], [0, 0, 1, 1], [], []>} : vector<2x64xf32>, vector<64x128xf32>, vector<2x128xf32> -> vector<2x128xf32>
    %161 = vector.broadcast %3 : vector<1x128xf32> to vector<2x128xf32>
    %162 = arith.addf %160, %161 : vector<2x128xf32>
    %163 = math.tanh %162 : vector<2x128xf32>
    %164 = arith.negf %162 : vector<2x128xf32>
    %165 = math.exp %164 : vector<2x128xf32>
    %cst_31 = arith.constant 1.000000e+00 : f32
    %166 = vector.broadcast %cst_31 : f32 to vector<2x128xf32>
    %167 = arith.addf %166, %165 : vector<2x128xf32>
    %168 = arith.divf %166, %167 : vector<2x128xf32>
    %169 = arith.select %9, %163, %168 : vector<2x128xi1>, vector<2x128xf32>
    %170 = vector.extract_strided_slice %169 {offsets = [0, 0], sizes = [2, 32], strides = [1, 1]} : vector<2x128xf32> to vector<2x32xf32>
    %171 = vector.extract_strided_slice %169 {offsets = [0, 32], sizes = [2, 32], strides = [1, 1]} : vector<2x128xf32> to vector<2x32xf32>
    %172 = vector.extract_strided_slice %169 {offsets = [0, 64], sizes = [2, 32], strides = [1, 1]} : vector<2x128xf32> to vector<2x32xf32>
    %173 = vector.extract_strided_slice %169 {offsets = [0, 96], sizes = [2, 32], strides = [1, 1]} : vector<2x128xf32> to vector<2x32xf32>
    %174 = arith.mulf %171, %134 : vector<2x32xf32>
    %175 = arith.mulf %170, %172 : vector<2x32xf32>
    %176 = arith.addf %174, %175 : vector<2x32xf32>
    %177 = math.tanh %176 : vector<2x32xf32>
    %178 = arith.mulf %173, %177 : vector<2x32xf32>
    %c4 = arith.constant 4 : index
    %c0_32 = arith.constant 0 : index
    %c0_33 = arith.constant 0 : index
    %179 = vector.load %arg0[%c4, %c0_32, %c0_33] : memref<8x2x4xf32, #tpu.memory_space<vmem>>, vector<1x2x4xf32>
    %180 = vector.shape_cast %179 : vector<1x2x4xf32> to vector<2x4xf32>
    %181 = tpu.concatenate %180, %158 in 1 : vector<2x4xf32>, vector<2x32xf32> -> vector<2x36xf32>
    %cst_34 = arith.constant dense<0.000000e+00> : vector<2x128xf32>
    %182 = tpu.matmul %181, %0, %cst_34 {dimension_numbers = #tpu.dot_dimension_numbers<[1], [0], [0], [1], [0, 0, 1, 1], [], []>} : vector<2x36xf32>, vector<36x128xf32>, vector<2x128xf32> -> vector<2x128xf32>
    %183 = vector.broadcast %2 : vector<1x128xf32> to vector<2x128xf32>
    %184 = arith.addf %182, %183 : vector<2x128xf32>
    %185 = math.tanh %184 : vector<2x128xf32>
    %186 = arith.negf %184 : vector<2x128xf32>
    %187 = math.exp %186 : vector<2x128xf32>
    %cst_35 = arith.constant 1.000000e+00 : f32
    %188 = vector.broadcast %cst_35 : f32 to vector<2x128xf32>
    %189 = arith.addf %188, %187 : vector<2x128xf32>
    %190 = arith.divf %188, %189 : vector<2x128xf32>
    %191 = arith.select %9, %185, %190 : vector<2x128xi1>, vector<2x128xf32>
    %192 = vector.extract_strided_slice %191 {offsets = [0, 0], sizes = [2, 32], strides = [1, 1]} : vector<2x128xf32> to vector<2x32xf32>
    %193 = vector.extract_strided_slice %191 {offsets = [0, 32], sizes = [2, 32], strides = [1, 1]} : vector<2x128xf32> to vector<2x32xf32>
    %194 = vector.extract_strided_slice %191 {offsets = [0, 64], sizes = [2, 32], strides = [1, 1]} : vector<2x128xf32> to vector<2x32xf32>
    %195 = vector.extract_strided_slice %191 {offsets = [0, 96], sizes = [2, 32], strides = [1, 1]} : vector<2x128xf32> to vector<2x32xf32>
    %196 = arith.mulf %193, %156 : vector<2x32xf32>
    %197 = arith.mulf %192, %194 : vector<2x32xf32>
    %198 = arith.addf %196, %197 : vector<2x32xf32>
    %199 = math.tanh %198 : vector<2x32xf32>
    %200 = arith.mulf %195, %199 : vector<2x32xf32>
    %201 = tpu.concatenate %200, %178 in 1 : vector<2x32xf32>, vector<2x32xf32> -> vector<2x64xf32>
    %cst_36 = arith.constant dense<0.000000e+00> : vector<2x128xf32>
    %202 = tpu.matmul %201, %1, %cst_36 {dimension_numbers = #tpu.dot_dimension_numbers<[1], [0], [0], [1], [0, 0, 1, 1], [], []>} : vector<2x64xf32>, vector<64x128xf32>, vector<2x128xf32> -> vector<2x128xf32>
    %203 = vector.broadcast %3 : vector<1x128xf32> to vector<2x128xf32>
    %204 = arith.addf %202, %203 : vector<2x128xf32>
    %205 = math.tanh %204 : vector<2x128xf32>
    %206 = arith.negf %204 : vector<2x128xf32>
    %207 = math.exp %206 : vector<2x128xf32>
    %cst_37 = arith.constant 1.000000e+00 : f32
    %208 = vector.broadcast %cst_37 : f32 to vector<2x128xf32>
    %209 = arith.addf %208, %207 : vector<2x128xf32>
    %210 = arith.divf %208, %209 : vector<2x128xf32>
    %211 = arith.select %9, %205, %210 : vector<2x128xi1>, vector<2x128xf32>
    %212 = vector.extract_strided_slice %211 {offsets = [0, 0], sizes = [2, 32], strides = [1, 1]} : vector<2x128xf32> to vector<2x32xf32>
    %213 = vector.extract_strided_slice %211 {offsets = [0, 32], sizes = [2, 32], strides = [1, 1]} : vector<2x128xf32> to vector<2x32xf32>
    %214 = vector.extract_strided_slice %211 {offsets = [0, 64], sizes = [2, 32], strides = [1, 1]} : vector<2x128xf32> to vector<2x32xf32>
    %215 = vector.extract_strided_slice %211 {offsets = [0, 96], sizes = [2, 32], strides = [1, 1]} : vector<2x128xf32> to vector<2x32xf32>
    %216 = arith.mulf %213, %176 : vector<2x32xf32>
    %217 = arith.mulf %212, %214 : vector<2x32xf32>
    %218 = arith.addf %216, %217 : vector<2x32xf32>
    %219 = math.tanh %218 : vector<2x32xf32>
    %220 = arith.mulf %215, %219 : vector<2x32xf32>
    %c5 = arith.constant 5 : index
    %c0_38 = arith.constant 0 : index
    %c0_39 = arith.constant 0 : index
    %221 = vector.load %arg0[%c5, %c0_38, %c0_39] : memref<8x2x4xf32, #tpu.memory_space<vmem>>, vector<1x2x4xf32>
    %222 = vector.shape_cast %221 : vector<1x2x4xf32> to vector<2x4xf32>
    %223 = tpu.concatenate %222, %200 in 1 : vector<2x4xf32>, vector<2x32xf32> -> vector<2x36xf32>
    %cst_40 = arith.constant dense<0.000000e+00> : vector<2x128xf32>
    %224 = tpu.matmul %223, %0, %cst_40 {dimension_numbers = #tpu.dot_dimension_numbers<[1], [0], [0], [1], [0, 0, 1, 1], [], []>} : vector<2x36xf32>, vector<36x128xf32>, vector<2x128xf32> -> vector<2x128xf32>
    %225 = vector.broadcast %2 : vector<1x128xf32> to vector<2x128xf32>
    %226 = arith.addf %224, %225 : vector<2x128xf32>
    %227 = math.tanh %226 : vector<2x128xf32>
    %228 = arith.negf %226 : vector<2x128xf32>
    %229 = math.exp %228 : vector<2x128xf32>
    %cst_41 = arith.constant 1.000000e+00 : f32
    %230 = vector.broadcast %cst_41 : f32 to vector<2x128xf32>
    %231 = arith.addf %230, %229 : vector<2x128xf32>
    %232 = arith.divf %230, %231 : vector<2x128xf32>
    %233 = arith.select %9, %227, %232 : vector<2x128xi1>, vector<2x128xf32>
    %234 = vector.extract_strided_slice %233 {offsets = [0, 0], sizes = [2, 32], strides = [1, 1]} : vector<2x128xf32> to vector<2x32xf32>
    %235 = vector.extract_strided_slice %233 {offsets = [0, 32], sizes = [2, 32], strides = [1, 1]} : vector<2x128xf32> to vector<2x32xf32>
    %236 = vector.extract_strided_slice %233 {offsets = [0, 64], sizes = [2, 32], strides = [1, 1]} : vector<2x128xf32> to vector<2x32xf32>
    %237 = vector.extract_strided_slice %233 {offsets = [0, 96], sizes = [2, 32], strides = [1, 1]} : vector<2x128xf32> to vector<2x32xf32>
    %238 = arith.mulf %235, %198 : vector<2x32xf32>
    %239 = arith.mulf %234, %236 : vector<2x32xf32>
    %240 = arith.addf %238, %239 : vector<2x32xf32>
    %241 = math.tanh %240 : vector<2x32xf32>
    %242 = arith.mulf %237, %241 : vector<2x32xf32>
    %243 = tpu.concatenate %242, %220 in 1 : vector<2x32xf32>, vector<2x32xf32> -> vector<2x64xf32>
    %cst_42 = arith.constant dense<0.000000e+00> : vector<2x128xf32>
    %244 = tpu.matmul %243, %1, %cst_42 {dimension_numbers = #tpu.dot_dimension_numbers<[1], [0], [0], [1], [0, 0, 1, 1], [], []>} : vector<2x64xf32>, vector<64x128xf32>, vector<2x128xf32> -> vector<2x128xf32>
    %245 = vector.broadcast %3 : vector<1x128xf32> to vector<2x128xf32>
    %246 = arith.addf %244, %245 : vector<2x128xf32>
    %247 = math.tanh %246 : vector<2x128xf32>
    %248 = arith.negf %246 : vector<2x128xf32>
    %249 = math.exp %248 : vector<2x128xf32>
    %cst_43 = arith.constant 1.000000e+00 : f32
    %250 = vector.broadcast %cst_43 : f32 to vector<2x128xf32>
    %251 = arith.addf %250, %249 : vector<2x128xf32>
    %252 = arith.divf %250, %251 : vector<2x128xf32>
    %253 = arith.select %9, %247, %252 : vector<2x128xi1>, vector<2x128xf32>
    %254 = vector.extract_strided_slice %253 {offsets = [0, 0], sizes = [2, 32], strides = [1, 1]} : vector<2x128xf32> to vector<2x32xf32>
    %255 = vector.extract_strided_slice %253 {offsets = [0, 32], sizes = [2, 32], strides = [1, 1]} : vector<2x128xf32> to vector<2x32xf32>
    %256 = vector.extract_strided_slice %253 {offsets = [0, 64], sizes = [2, 32], strides = [1, 1]} : vector<2x128xf32> to vector<2x32xf32>
    %257 = vector.extract_strided_slice %253 {offsets = [0, 96], sizes = [2, 32], strides = [1, 1]} : vector<2x128xf32> to vector<2x32xf32>
    %258 = arith.mulf %255, %218 : vector<2x32xf32>
    %259 = arith.mulf %254, %256 : vector<2x32xf32>
    %260 = arith.addf %258, %259 : vector<2x32xf32>
    %261 = math.tanh %260 : vector<2x32xf32>
    %262 = arith.mulf %257, %261 : vector<2x32xf32>
    %c6 = arith.constant 6 : index
    %c0_44 = arith.constant 0 : index
    %c0_45 = arith.constant 0 : index
    %263 = vector.load %arg0[%c6, %c0_44, %c0_45] : memref<8x2x4xf32, #tpu.memory_space<vmem>>, vector<1x2x4xf32>
    %264 = vector.shape_cast %263 : vector<1x2x4xf32> to vector<2x4xf32>
    %265 = tpu.concatenate %264, %242 in 1 : vector<2x4xf32>, vector<2x32xf32> -> vector<2x36xf32>
    %cst_46 = arith.constant dense<0.000000e+00> : vector<2x128xf32>
    %266 = tpu.matmul %265, %0, %cst_46 {dimension_numbers = #tpu.dot_dimension_numbers<[1], [0], [0], [1], [0, 0, 1, 1], [], []>} : vector<2x36xf32>, vector<36x128xf32>, vector<2x128xf32> -> vector<2x128xf32>
    %267 = vector.broadcast %2 : vector<1x128xf32> to vector<2x128xf32>
    %268 = arith.addf %266, %267 : vector<2x128xf32>
    %269 = math.tanh %268 : vector<2x128xf32>
    %270 = arith.negf %268 : vector<2x128xf32>
    %271 = math.exp %270 : vector<2x128xf32>
    %cst_47 = arith.constant 1.000000e+00 : f32
    %272 = vector.broadcast %cst_47 : f32 to vector<2x128xf32>
    %273 = arith.addf %272, %271 : vector<2x128xf32>
    %274 = arith.divf %272, %273 : vector<2x128xf32>
    %275 = arith.select %9, %269, %274 : vector<2x128xi1>, vector<2x128xf32>
    %276 = vector.extract_strided_slice %275 {offsets = [0, 0], sizes = [2, 32], strides = [1, 1]} : vector<2x128xf32> to vector<2x32xf32>
    %277 = vector.extract_strided_slice %275 {offsets = [0, 32], sizes = [2, 32], strides = [1, 1]} : vector<2x128xf32> to vector<2x32xf32>
    %278 = vector.extract_strided_slice %275 {offsets = [0, 64], sizes = [2, 32], strides = [1, 1]} : vector<2x128xf32> to vector<2x32xf32>
    %279 = vector.extract_strided_slice %275 {offsets = [0, 96], sizes = [2, 32], strides = [1, 1]} : vector<2x128xf32> to vector<2x32xf32>
    %280 = arith.mulf %277, %240 : vector<2x32xf32>
    %281 = arith.mulf %276, %278 : vector<2x32xf32>
    %282 = arith.addf %280, %281 : vector<2x32xf32>
    %283 = math.tanh %282 : vector<2x32xf32>
    %284 = arith.mulf %279, %283 : vector<2x32xf32>
    %285 = tpu.concatenate %284, %262 in 1 : vector<2x32xf32>, vector<2x32xf32> -> vector<2x64xf32>
    %cst_48 = arith.constant dense<0.000000e+00> : vector<2x128xf32>
    %286 = tpu.matmul %285, %1, %cst_48 {dimension_numbers = #tpu.dot_dimension_numbers<[1], [0], [0], [1], [0, 0, 1, 1], [], []>} : vector<2x64xf32>, vector<64x128xf32>, vector<2x128xf32> -> vector<2x128xf32>
    %287 = vector.broadcast %3 : vector<1x128xf32> to vector<2x128xf32>
    %288 = arith.addf %286, %287 : vector<2x128xf32>
    %289 = math.tanh %288 : vector<2x128xf32>
    %290 = arith.negf %288 : vector<2x128xf32>
    %291 = math.exp %290 : vector<2x128xf32>
    %cst_49 = arith.constant 1.000000e+00 : f32
    %292 = vector.broadcast %cst_49 : f32 to vector<2x128xf32>
    %293 = arith.addf %292, %291 : vector<2x128xf32>
    %294 = arith.divf %292, %293 : vector<2x128xf32>
    %295 = arith.select %9, %289, %294 : vector<2x128xi1>, vector<2x128xf32>
    %296 = vector.extract_strided_slice %295 {offsets = [0, 0], sizes = [2, 32], strides = [1, 1]} : vector<2x128xf32> to vector<2x32xf32>
    %297 = vector.extract_strided_slice %295 {offsets = [0, 32], sizes = [2, 32], strides = [1, 1]} : vector<2x128xf32> to vector<2x32xf32>
    %298 = vector.extract_strided_slice %295 {offsets = [0, 64], sizes = [2, 32], strides = [1, 1]} : vector<2x128xf32> to vector<2x32xf32>
    %299 = vector.extract_strided_slice %295 {offsets = [0, 96], sizes = [2, 32], strides = [1, 1]} : vector<2x128xf32> to vector<2x32xf32>
    %300 = arith.mulf %297, %260 : vector<2x32xf32>
    %301 = arith.mulf %296, %298 : vector<2x32xf32>
    %302 = arith.addf %300, %301 : vector<2x32xf32>
    %303 = math.tanh %302 : vector<2x32xf32>
    %304 = arith.mulf %299, %303 : vector<2x32xf32>
    %c7 = arith.constant 7 : index
    %c0_50 = arith.constant 0 : index
    %c0_51 = arith.constant 0 : index
    %305 = vector.load %arg0[%c7, %c0_50, %c0_51] : memref<8x2x4xf32, #tpu.memory_space<vmem>>, vector<1x2x4xf32>
    %306 = vector.shape_cast %305 : vector<1x2x4xf32> to vector<2x4xf32>
    %307 = tpu.concatenate %306, %284 in 1 : vector<2x4xf32>, vector<2x32xf32> -> vector<2x36xf32>
    %cst_52 = arith.constant dense<0.000000e+00> : vector<2x128xf32>
    %308 = tpu.matmul %307, %0, %cst_52 {dimension_numbers = #tpu.dot_dimension_numbers<[1], [0], [0], [1], [0, 0, 1, 1], [], []>} : vector<2x36xf32>, vector<36x128xf32>, vector<2x128xf32> -> vector<2x128xf32>
    %309 = vector.broadcast %2 : vector<1x128xf32> to vector<2x128xf32>
    %310 = arith.addf %308, %309 : vector<2x128xf32>
    %311 = math.tanh %310 : vector<2x128xf32>
    %312 = arith.negf %310 : vector<2x128xf32>
    %313 = math.exp %312 : vector<2x128xf32>
    %cst_53 = arith.constant 1.000000e+00 : f32
    %314 = vector.broadcast %cst_53 : f32 to vector<2x128xf32>
    %315 = arith.addf %314, %313 : vector<2x128xf32>
    %316 = arith.divf %314, %315 : vector<2x128xf32>
    %317 = arith.select %9, %311, %316 : vector<2x128xi1>, vector<2x128xf32>
    %318 = vector.extract_strided_slice %317 {offsets = [0, 0], sizes = [2, 32], strides = [1, 1]} : vector<2x128xf32> to vector<2x32xf32>
    %319 = vector.extract_strided_slice %317 {offsets = [0, 32], sizes = [2, 32], strides = [1, 1]} : vector<2x128xf32> to vector<2x32xf32>
    %320 = vector.extract_strided_slice %317 {offsets = [0, 64], sizes = [2, 32], strides = [1, 1]} : vector<2x128xf32> to vector<2x32xf32>
    %321 = vector.extract_strided_slice %317 {offsets = [0, 96], sizes = [2, 32], strides = [1, 1]} : vector<2x128xf32> to vector<2x32xf32>
    %322 = arith.mulf %319, %282 : vector<2x32xf32>
    %323 = arith.mulf %318, %320 : vector<2x32xf32>
    %324 = arith.addf %322, %323 : vector<2x32xf32>
    %325 = math.tanh %324 : vector<2x32xf32>
    %326 = arith.mulf %321, %325 : vector<2x32xf32>
    %327 = tpu.concatenate %326, %304 in 1 : vector<2x32xf32>, vector<2x32xf32> -> vector<2x64xf32>
    %cst_54 = arith.constant dense<0.000000e+00> : vector<2x128xf32>
    %328 = tpu.matmul %327, %1, %cst_54 {dimension_numbers = #tpu.dot_dimension_numbers<[1], [0], [0], [1], [0, 0, 1, 1], [], []>} : vector<2x64xf32>, vector<64x128xf32>, vector<2x128xf32> -> vector<2x128xf32>
    %329 = vector.broadcast %3 : vector<1x128xf32> to vector<2x128xf32>
    %330 = arith.addf %328, %329 : vector<2x128xf32>
    %331 = math.tanh %330 : vector<2x128xf32>
    %332 = arith.negf %330 : vector<2x128xf32>
    %333 = math.exp %332 : vector<2x128xf32>
    %cst_55 = arith.constant 1.000000e+00 : f32
    %334 = vector.broadcast %cst_55 : f32 to vector<2x128xf32>
    %335 = arith.addf %334, %333 : vector<2x128xf32>
    %336 = arith.divf %334, %335 : vector<2x128xf32>
    %337 = arith.select %9, %331, %336 : vector<2x128xi1>, vector<2x128xf32>
    %338 = vector.extract_strided_slice %337 {offsets = [0, 0], sizes = [2, 32], strides = [1, 1]} : vector<2x128xf32> to vector<2x32xf32>
    %339 = vector.extract_strided_slice %337 {offsets = [0, 32], sizes = [2, 32], strides = [1, 1]} : vector<2x128xf32> to vector<2x32xf32>
    %340 = vector.extract_strided_slice %337 {offsets = [0, 64], sizes = [2, 32], strides = [1, 1]} : vector<2x128xf32> to vector<2x32xf32>
    %341 = vector.extract_strided_slice %337 {offsets = [0, 96], sizes = [2, 32], strides = [1, 1]} : vector<2x128xf32> to vector<2x32xf32>
    %342 = arith.mulf %339, %302 : vector<2x32xf32>
    %343 = arith.mulf %338, %340 : vector<2x32xf32>
    %344 = arith.addf %342, %343 : vector<2x32xf32>
    %345 = math.tanh %344 : vector<2x32xf32>
    %346 = arith.mulf %341, %345 : vector<2x32xf32>
    %347 = tpu.concatenate %52, %94, %136, %178, %220, %262, %304, %346 in 0 : vector<2x32xf32>, vector<2x32xf32>, vector<2x32xf32>, vector<2x32xf32>, vector<2x32xf32>, vector<2x32xf32>, vector<2x32xf32>, vector<2x32xf32> -> vector<16x32xf32>
    %c0_56 = arith.constant 0 : index
    %c0_57 = arith.constant 0 : index
    %348 = vector.load %arg5[%c0_56, %c0_57] : memref<32x1xf32, #tpu.memory_space<vmem>>, vector<32x1xf32>
    %cst_58 = arith.constant dense<0.000000e+00> : vector<16x1xf32>
    %349 = tpu.matmul %347, %348, %cst_58 {dimension_numbers = #tpu.dot_dimension_numbers<[1], [0], [0], [1], [0, 0, 1, 1], [], []>} : vector<16x32xf32>, vector<32x1xf32>, vector<16x1xf32> -> vector<16x1xf32>
    %c0_59 = arith.constant 0 : index
    %c0_60 = arith.constant 0 : index
    %350 = vector.load %arg6[%c0_59, %c0_60] : memref<1x1xf32, #tpu.memory_space<vmem>>, vector<1x1xf32>
    %351 = vector.broadcast %350 : vector<1x1xf32> to vector<16x1xf32>
    %352 = arith.addf %349, %351 : vector<16x1xf32>
    %c0_61 = arith.constant 0 : index
    %c0_62 = arith.constant 0 : index
    %353 = vector.load %arg7[%c0_61, %c0_62] : memref<16x1xf32, #tpu.memory_space<vmem>>, vector<16x1xf32>
    tpu.vector_store %arg7[%c0_61, %c0_62], %352 {strides = array<i32>} : memref<16x1xf32, #tpu.memory_space<vmem>>, vector<16x1xf32>,
    return
  }
}

</mosaic_0001>

<bundles_post_ra>
// kernel: tpu_custom_call.1
= control target key start
LH: loop header
LB: loop body
LE: loop exit
PB: predicated region body
PF: predicated region fallthrough
CT: control target
= control target key end

     0   :  { %s3192_s0 = inlined_call_operand.vmem [shape: f32[8,2,4], index: 0, kind: input, shape index: {}]   ;;  %s3193_s1 = inlined_call_operand.hbm [shape: f32[36,128], index: 1, kind: input, shape index: {}]   ;;  %s3194_s2 = inlined_call_operand.vmem [shape: f32[1,128], index: 2, kind: input, shape index: {}]   ;;  %s3195_s3 = inlined_call_operand.vmem [shape: f32[64,128], index: 3, kind: input, shape index: {}]   ;;  %s3196_s4 = inlined_call_operand.vmem [shape: f32[1,128], index: 4, kind: input, shape index: {}]   ;;  %s3197_s5 = inlined_call_operand.vmem [shape: f32[32,1], index: 5, kind: input, shape index: {}]   ;;  %s3198_s6 = inlined_call_operand.<no memory space> [shape: f32[1,1], index: 6, kind: input, shape index: {}]   ;;  %s3199_s7 = inlined_call_operand.vmem [shape: f32[16,1], index: 7, kind: output, shape index: {}]  }
   0x1   :  { %v12_v0 = vstv %s3198_s6 }
   0x2   :  { %13 = vst [vmem:[#allocation2] sm:$0x1] %v12_v0 }
   0x3   :  { %14 = vsyncpa [#allocation4], 0  ;;  %s2646_s26 = smov [#allocation3]   ;;  %s2622_s30 = scalar_lea.hbm %s3193_s1, 640 }
   0x4   :  { %s22_s27 = sshll.u32 %s2646_s26, 4  ;;  %p2623_p0 = scmp.ne.s32.totalorder %s3193_s1, %s2622_s30  ;;  %s23_s27 = int_to_ptr.vmem [resolvable:$true] %s22_s27 }
   0x5   :  { %p2626_p1 = scmp.lt.u32.totalorder %s2622_s30, %s3193_s1 }
   0x7   :  { %p2628_p2 = pnand %p2626_p1, %p2623_p0 }
   0x9   :  { %2631 = shalt.err (!%p2628_p2)
}
   0xa   :  { %s2632_s6 = scalar_lea.vmem %s23_s27, 640  ;;  %p2637_p4 = scmp.lt.s32.totalorder %s23_s27, %s23_s27 }
   0xb   :  { %p2633_p3 = scmp.ne.s32.totalorder %s23_s27, %s2632_s6  ;;  %p2638_p5 = scmp.lt.s32.totalorder %s2632_s6, %s2632_s6 }
   0xd   :  { %p2639_p6 = por %p2638_p5, %p2637_p4 }
   0xf   :  { %p2640_p7 = pnand %p2639_p6, %p2633_p3 }
  0x11   :  { %2643 = shalt.err (!%p2640_p7)
}
  0x12   :  { %s2647_s12 = smov 128   ;;  %s2648_s13 = smov 8  }
  0x13   :  { %28 = dma.hbm_to_vmem [thread:$0]  %s3193_s1, 640, %s23_s27, [#allocation4], %s2647_s12, %s2647_s12, %s2648_s13  }
  0x14   :  { %2644 = dma.done.wait [#allocation4], 640  }
  0x15   :  { %2645 = vsyncadd [#allocation4], 4294966656  ;;  %v2649_v1 = vmov 0.0|0.0   ;;  %vm2650_vm0 = vmmov 0   ;;  %v2651_v2 = vmov 0.0   ;;  %v42_v3 = vld [vmem:[#allocation3] sm:$0xff]  ;;  %v57_v18 = vlaneseq }
  0x16   :  { %2332 = vmatprep.subr.bf16.mxu0 %v2649_v1  ;;  %2075 = vmatprep.mubr.msk.f32.mxu0 %vm2650_vm0, %v2651_v2  ;;  %v43_v4 = vld [vmem:[#allocation3 + $0x8] sm:$0xff]  ;;  %v44_v5 = vld [vmem:[#allocation3 + $0x10] sm:$0xff]  ;;  %v45_v7 = vld [vmem:[#allocation3 + $0x18] sm:$0xff]  ;;  %vm63_vm1 = vcmask 31744   ;;  %vm75_vm2 = vcmask 1043456   ;;  %vm71_vm3 = vcmask 293888  }
  0x17   :  { %2338 = vmatprep.subr.bf16.mxu1 %v2649_v1  ;;  %2094 = vmatprep.mubr.msk.f32.mxu1 %vm2650_vm0, %v2651_v2  ;;  %v2716_v6 = vpack.c.bf16 %v43_v4, %v42_v3  ;;  %v2719_v8 = vpack.c.bf16 %v45_v7, %v44_v5  ;;  %v62_v9 = vld [vmem:[%s3192_s0] sm:$0x3]  ;;  %v58_v20 = vand.u32 127, %v57_v18  ;;  %s2652_s19 = smov 64   ;;  %s2653_s20 = smov 32   ;;  %v48_v31 = vld [vmem:[%s3195_s3 + $0x8] sm:$0xff] }
  0x18   :  { %v2727_v10 = vld [vmem:[#allocation3 + $0x20] sm:$0xf]  ;;  %v64_v11 = vsel %vm63_vm1, %v62_v9, 0.0  ;;  %v2746_v12 = vld [vmem:[%s3194_s2] ss:$0 sm:$0xff]  ;;  %v49_v32 = vld [vmem:[%s3195_s3 + $0x10] sm:$0xff] }
  0x19   :  { %2334 = vmatpush3.bf16.msra.mxu0 %v2716_v6  ;;  %vm59_vm4 = vcmp.ge.s32.totalorder %v58_v20, 64  ;;  %vm60_vm5 = vcmp.lt.s32.totalorder %v58_v20, 96  ;;  %v47_v30 = vld [vmem:[%s3195_s3] sm:$0xff]  ;;  %v50_v34 = vld [vmem:[%s3195_s3 + $0x18] sm:$0xff]  ;;  %v52_v37 = vld [vmem:[%s3195_s3 + $0x28] sm:$0xff]  ;;  %s2654_s13 = smov 36  }
  0x1a   :  { %2335 = vmatprep.subr.bf16.mxu0 %v2649_v1  ;;  %vm2749_vm6 = vmand %vm59_vm4, %vm60_vm5  ;;  %v2769_v33 = vpack.c.bf16 %v48_v31, %v47_v30  ;;  %v2775_v35 = vpack.c.bf16 %v50_v34, %v49_v32  ;;  %v51_v36 = vld [vmem:[%s3195_s3 + $0x20] sm:$0xff]  ;;  %v53_v39 = vld [vmem:[%s3195_s3 + $0x30] sm:$0xff]  ;;  %vm178_vm7 = vcmask 261120   ;;  %vm186_vm8 = vcmask 523264  }
  0x1b   :  { %v2785_v38 = vpack.c.bf16 %v52_v37, %v51_v36  ;;  %v54_v40 = vld [vmem:[%s3195_s3 + $0x38] sm:$0xff]  ;;  %v1894_v45 = vld [vmem:[%s3192_s0 + $0x2] sm:$0x3]  ;;  %v2832_v50 = vld [vmem:[%s3196_s4] ss:$0 sm:$0xff]  ;;  %vm1775_vm9 = vcmask 1041408  }
  0x1c   :  { %2340 = vmatpush3.bf16.msra.mxu1 %v2769_v33  ;;  %v2796_v42 = vpack.c.bf16 %v54_v40, %v53_v39  ;;  %v1900_v31 = vld [vmem:[%s3192_s0 + $0x4] sm:$0x3]  ;;  %vm1778_vm10 = vcmask 1045504   ;;  %vm1879_vm11 = vcmask 7168  }
  0x1d   :  { %2337 = vmatpush3.bf16.msra.mxu0 %v2719_v8  ;;  %2341 = vmatprep.subr.bf16.mxu1 %v2649_v1  ;;  %v1783_v21 = vld [vmem:[%s3197_s5] sm:$0xff] }
  0x1e   :  { %2073 = vmatprep.subr.mxu0 %v2651_v2 }
  0x20   :  { %2343 = vmatpush3.bf16.msra.mxu1 %v2775_v35 }
  0x21   :  { %2074 = vmatpush3.msk.msra.mxu0 %vm75_vm2, %v2727_v10  ;;  %2344 = vmatprep.subr.bf16.mxu1 %v2649_v1 }
  0x22   :  { %2076 = vmatmul.mubr.msk.f32.vlgmr.msra.gmra.mrb[0].mxu0 %vm71_vm3, %v64_v11  ;;  %2350 = vmatprep.subr.bf16.mxu0 %v2649_v1 }
  0x23   :  { %2352 = vmatpush3.bf16.msra.mxu0 %v2716_v6  ;;  %2107 = vmatprep.mubr.msk.f32.mxu0 %vm2650_vm0, %v2651_v2 }
  0x24   :  { %2353 = vmatprep.subr.bf16.mxu0 %v2649_v1  ;;  %2346 = vmatpush3.bf16.msra.mxu1 %v2785_v38 }
  0x25   :  { %2347 = vmatprep.subr.bf16.mxu1 %v2649_v1 }
  0x27   :  { %2355 = vmatpush3.bf16.msra.mxu0 %v2719_v8 }
  0x28   :  { %2105 = vmatprep.subr.mxu0 %v2651_v2  ;;  %2349 = vmatpush3.bf16.msra.mxu1 %v2796_v42 }
  0x29   :  { %2356 = vmatprep.subr.bf16.mxu1 %v2649_v1 }
  0x2b   :  { %2106 = vmatpush3.msk.msra.mxu0 %vm75_vm2, %v2727_v10 }
  0x2c   :  { %2368 = vmatprep.subr.bf16.mxu0 %v2649_v1 }
  0xf5   :  { %v145_v13 = vpop.f32.mrb[0].mxu0 }
  0xf6   :  { %v146_v14 = vadd.f32 %v2746_v12, %v145_v13  ;;  %v2077_v15 = vpop.f32.mrb[1].mxu0 }
  0xf8   :  { %v1890_v16 = vmul.f32 -1.442695, %v146_v14 }
  0xfa   :  { %2493 = vpow2.f32 %v1890_v16 }
  0xfb   :  { %2495 = vtanh.f32 %v146_v14 }
 0x104   :  { %v2494_v17 = vpop.eup %2493 }
 0x105   :  { %v153_v19 = vadd.f32 1.0, %v2494_v17  ;;  %v2496_v22 = vpop.eup %2495 }
 0x107   :  { %2497 = vrcp.f32 %v153_v19 }
 0x111   :  { %v2498_v23 = vpop.eup %2497 }
 0x112   :  { %v156_v24 = vsel %vm2749_vm6, %v2496_v22, %v2498_v23 }
 0x113   :  { %159 = vrot.lane.b32.xlu0 %v156_v24, %s2652_s19  ;;  %v157_v27 = vmul.f32 0.0, %v156_v24 }
 0x185   :  { %v160_v25 = vpop.permute.xlu0 %159 }
 0x186   :  { %v162_v26 = vmul.f32 %v160_v25, %v156_v24 }
 0x188   :  { %164 = vrot.lane.b32.xlu0 %v162_v26, %s2653_s20 }
 0x1fa   :  { %v165_v28 = vpop.permute.xlu0 %164 }
 0x1fb   :  { %v2757_v29 = vadd.f32 %v165_v28, %v157_v27 }
 0x1fd   :  { %2499 = vtanh.f32 %v2757_v29 }
 0x207   :  { %v2500_v41 = vpop.eup %2499 }
 0x208   :  { %170 = vrot.lane.b32.xlu1 %v2500_v41, %s2652_s19 }
 0x27a   :  { %v171_v43 = vpop.permute.xlu1 %170 }
 0x27b   :  { %v173_v44 = vmul.f32 %v171_v43, %v156_v24 }
 0x27d   :  { %287 = vrot.lane.b32.xlu0 %v173_v44, %s2654_s13  ;;  %175 = vrot.lane.b32.xlu1 %v173_v44, %s2653_s20 }
 0x2ef   :  { %v288_v46 = vpop.permute.xlu0 %287  ;;  %v176_v47 = vpop.permute.xlu1 %175 }
 0x2f0   :  { %v290_v48 = vsel %vm63_vm1, %v1894_v45, %v288_v46  ;;  %v179_v49 = vsel %vm178_vm7, %v176_v47, 0.0 }
 0x2f1   :  { %2095 = vmatmul.mubr.msk.f32.vlgmr.msra.gmra.mrb[0].mxu1 %vm186_vm8, %v179_v49  ;;  %2108 = vmatmul.mubr.msk.f32.vlgmr.msra.gmra.mrb[2].mxu0 %vm71_vm3, %v290_v48 }
 0x2f2   :  { %2358 = vmatpush3.bf16.msra.mxu1 %v2769_v33  ;;  %2370 = vmatpush3.bf16.msra.mxu0 %v2716_v6 }
 0x2f3   :  { %2359 = vmatprep.subr.bf16.mxu1 %v2649_v1  ;;  %2371 = vmatprep.subr.bf16.mxu0 %v2649_v1 }
 0x2f4   :  { %2126 = vmatprep.mubr.msk.f32.mxu1 %vm2650_vm0, %v2651_v2  ;;  %2139 = vmatprep.mubr.msk.f32.mxu0 %vm2650_vm0, %v2651_v2 }
 0x2f6   :  { %2361 = vmatpush3.bf16.msra.mxu1 %v2775_v35  ;;  %2373 = vmatpush3.bf16.msra.mxu0 %v2719_v8 }
 0x2f7   :  { %2362 = vmatprep.subr.bf16.mxu1 %v2649_v1  ;;  %2137 = vmatprep.subr.mxu0 %v2651_v2 }
 0x2fa   :  { %2364 = vmatpush3.bf16.msra.mxu1 %v2785_v38  ;;  %2138 = vmatpush3.msk.msra.mxu0 %vm75_vm2, %v2727_v10 }
 0x2fb   :  { %2365 = vmatprep.subr.bf16.mxu1 %v2649_v1  ;;  %2374 = vmatprep.subr.bf16.mxu0 %v2649_v1 }
 0x2fe   :  { %2367 = vmatpush3.bf16.msra.mxu1 %v2796_v42 }
 0x2ff   :  { %2386 = vmatprep.subr.bf16.mxu1 %v2649_v1 }
 0x3c4   :  { %v256_v51 = vpop.f32.mrb[0].mxu1  ;;  %v360_v52 = vpop.f32.mrb[2].mxu0 }
 0x3c5   :  { %v257_v53 = vadd.f32 %v2832_v50, %v256_v51  ;;  %v361_v54 = vadd.f32 %v2746_v12, %v360_v52  ;;  %v2096_v55 = vpop.f32.mrb[1].mxu1  ;;  %v2109_v56 = vpop.f32.mrb[3].mxu0 }
 0x3c7   :  { %v1893_v57 = vmul.f32 -1.442695, %v257_v53  ;;  %v1897_v58 = vmul.f32 -1.442695, %v361_v54 }
 0x3c9   :  { %2501 = vpow2.f32 %v1893_v57 }
 0x3ca   :  { %2503 = vpow2.f32 %v1897_v58 }
 0x3cb   :  { %2505 = vtanh.f32 %v257_v53 }
 0x3cc   :  { %2507 = vtanh.f32 %v361_v54 }
 0x3d3   :  { %v2502_v59 = vpop.eup %2501 }
 0x3d4   :  { %v2504_v60 = vpop.eup %2503  ;;  %v264_v61 = vadd.f32 1.0, %v2502_v59 }
 0x3d5   :  { %v368_v62 = vadd.f32 1.0, %v2504_v60  ;;  %v2506_v63 = vpop.eup %2505 }
 0x3d6   :  { %2509 = vrcp.f32 %v264_v61  ;;  %v2508_v0 = vpop.eup %2507 }
 0x3d7   :  { %2511 = vrcp.f32 %v368_v62 }
 0x3e0   :  { %v2510_v3 = vpop.eup %2509 }
 0x3e1   :  { %v2512_v4 = vpop.eup %2511  ;;  %v267_v5 = vsel %vm2749_vm6, %v2506_v63, %v2510_v3 }
 0x3e2   :  { %270 = vrot.lane.b32.xlu1 %v267_v5, %s2652_s19  ;;  %v371_v7 = vsel %vm2749_vm6, %v2508_v0, %v2512_v4  ;;  %v268_v15 = vmul.f32 0.0, %v267_v5 }
 0x3e3   :  { %374 = vrot.lane.b32.xlu0 %v371_v7, %s2652_s19  ;;  %v372_v17 = vmul.f32 %v371_v7, %v2757_v29 }
 0x454   :  { %v271_v9 = vpop.permute.xlu1 %270 }
 0x455   :  { %v273_v11 = vmul.f32 %v271_v9, %v267_v5  ;;  %v375_v13 = vpop.permute.xlu0 %374 }
 0x456   :  { %v377_v14 = vmul.f32 %v375_v13, %v371_v7 }
 0x457   :  { %275 = vrot.lane.b32.xlu1 %v273_v11, %s2653_s20 }
 0x458   :  { %379 = vrot.lane.b32.xlu0 %v377_v14, %s2653_s20 }
 0x4c9   :  { %v276_v16 = vpop.permute.xlu1 %275 }
 0x4ca   :  { %v2845_v18 = vadd.f32 %v276_v16, %v268_v15  ;;  %v380_v19 = vpop.permute.xlu0 %379 }
 0x4cb   :  { %v2847_v20 = vadd.f32 %v380_v19, %v372_v17 }
 0x4cc   :  { %2513 = vtanh.f32 %v2845_v18 }
 0x4cd   :  { %2515 = vtanh.f32 %v2847_v20 }
 0x4d6   :  { %v2514_v22 = vpop.eup %2513 }
 0x4d7   :  { %v2516_v23 = vpop.eup %2515  ;;  %281 = vrot.lane.b32.xlu1 %v2514_v22, %s2652_s19 }
 0x4d8   :  { %385 = vrot.lane.b32.xlu0 %v2516_v23, %s2652_s19 }
 0x549   :  { %v282_v24 = vpop.permute.xlu1 %281 }
 0x54a   :  { %v2853_v25 = vmul.f32 %v282_v24, %v267_v5  ;;  %v386_v26 = vpop.permute.xlu0 %385 }
 0x54b   :  { %v388_v27 = vmul.f32 %v386_v26, %v371_v7 }
 0x54c   :  { %394 = vrot.lane.b32.xlu0 %v2853_v25, %s2652_s19 }
 0x54d   :  { %390 = vrot.lane.b32.xlu1 %v388_v27, %s2653_s20 }
 0x551   :  { %498 = vrot.lane.b32.xlu1 %v388_v27, %s2654_s13 }
 0x5be   :  { %v395_v28 = vpop.permute.xlu0 %394 }
 0x5bf   :  { %v391_v29 = vpop.permute.xlu1 %390 }
 0x5c0   :  { %v397_v30 = vsel %vm178_vm7, %v391_v29, %v395_v28 }
 0x5c1   :  { %2127 = vmatmul.mubr.msk.f32.vlgmr.msra.gmra.mrb[2].mxu1 %vm186_vm8, %v397_v30 }
 0x5c2   :  { %2388 = vmatpush3.bf16.msra.mxu1 %v2716_v6  ;;  %2171 = vmatprep.mubr.msk.f32.mxu1 %vm2650_vm0, %v2651_v2 }
 0x5c3   :  { %v499_v32 = vpop.permute.xlu1 %498  ;;  %2389 = vmatprep.subr.bf16.mxu1 %v2649_v1 }
 0x5c4   :  { %v501_v34 = vsel %vm63_vm1, %v1900_v31, %v499_v32 }
 0x5c5   :  { %2140 = vmatmul.mubr.msk.f32.vlgmr.msra.gmra.mrb[4].mxu0 %vm71_vm3, %v501_v34 }
 0x5c6   :  { %2376 = vmatpush3.bf16.msra.mxu0 %v2769_v33  ;;  %2158 = vmatprep.mubr.msk.f32.mxu0 %vm2650_vm0, %v2651_v2 }
 0x5c7   :  { %2377 = vmatprep.subr.bf16.mxu0 %v2649_v1  ;;  %2391 = vmatpush3.bf16.msra.mxu1 %v2719_v8 }
 0x5c8   :  { %2169 = vmatprep.subr.mxu1 %v2651_v2 }
 0x5ca   :  { %2379 = vmatpush3.bf16.msra.mxu0 %v2775_v35 }
 0x5cb   :  { %2380 = vmatprep.subr.bf16.mxu0 %v2649_v1  ;;  %2170 = vmatpush3.msk.msra.mxu1 %vm75_vm2, %v2727_v10 }
 0x5cc   :  { %2392 = vmatprep.subr.bf16.mxu1 %v2649_v1 }
 0x5ce   :  { %2382 = vmatpush3.bf16.msra.mxu0 %v2785_v38 }
 0x5cf   :  { %2383 = vmatprep.subr.bf16.mxu0 %v2649_v1 }
 0x5d2   :  { %2385 = vmatpush3.bf16.msra.mxu0 %v2796_v42 }
 0x5d3   :  { %2404 = vmatprep.subr.bf16.mxu0 %v2649_v1 }
 0x694   :  { %v467_v36 = vpop.f32.mrb[2].mxu1 }
 0x695   :  { %v468_v37 = vadd.f32 %v2832_v50, %v467_v36  ;;  %v2128_v39 = vpop.f32.mrb[3].mxu1 }
 0x697   :  { %v1899_v40 = vmul.f32 -1.442695, %v468_v37 }
 0x698   :  { %v571_v41 = vpop.f32.mrb[4].mxu0 }
 0x699   :  { %2517 = vpow2.f32 %v1899_v40  ;;  %v572_v43 = vadd.f32 %v2746_v12, %v571_v41  ;;  %v2141_v44 = vpop.f32.mrb[5].mxu0 }
 0x69b   :  { %v1903_v45 = vmul.f32 -1.442695, %v572_v43 }
 0x69d   :  { %2519 = vpow2.f32 %v1903_v45 }
 0x69e   :  { %2521 = vtanh.f32 %v468_v37 }
 0x6a3   :  { %v2518_v46 = vpop.eup %2517 }
 0x6a4   :  { %v475_v47 = vadd.f32 1.0, %v2518_v46 }
 0x6a6   :  { %2523 = vrcp.f32 %v475_v47 }
 0x6a7   :  { %v2520_v48 = vpop.eup %2519  ;;  %2525 = vtanh.f32 %v572_v43 }
 0x6a8   :  { %v579_v49 = vadd.f32 1.0, %v2520_v48  ;;  %v2522_v51 = vpop.eup %2521 }
 0x6aa   :  { %2527 = vrcp.f32 %v579_v49 }
 0x6b0   :  { %v2524_v52 = vpop.eup %2523 }
 0x6b1   :  { %v478_v53 = vsel %vm2749_vm6, %v2522_v51, %v2524_v52  ;;  %v2526_v54 = vpop.eup %2525 }
 0x6b2   :  { %481 = vrot.lane.b32.xlu0 %v478_v53, %s2652_s19  ;;  %v479_v61 = vmul.f32 %v478_v53, %v2845_v18  ;;  %v1906_v18 = vld [vmem:[%s3192_s0 + $0x6] sm:$0x3] }
 0x6b4   :  { %v2528_v55 = vpop.eup %2527 }
 0x6b5   :  { %v582_v56 = vsel %vm2749_vm6, %v2526_v54, %v2528_v55 }
 0x6b6   :  { %585 = vrot.lane.b32.xlu1 %v582_v56, %s2652_s19  ;;  %v583_v0 = vmul.f32 %v582_v56, %v2847_v20 }
 0x724   :  { %v482_v57 = vpop.permute.xlu0 %481 }
 0x725   :  { %v484_v58 = vmul.f32 %v482_v57, %v478_v53 }
 0x727   :  { %486 = vrot.lane.b32.xlu0 %v484_v58, %s2653_s20 }
 0x728   :  { %v586_v59 = vpop.permute.xlu1 %585 }
 0x729   :  { %v588_v60 = vmul.f32 %v586_v59, %v582_v56 }
 0x72b   :  { %590 = vrot.lane.b32.xlu1 %v588_v60, %s2653_s20 }
 0x799   :  { %v487_v62 = vpop.permute.xlu0 %486 }
 0x79a   :  { %v2896_v63 = vadd.f32 %v487_v62, %v479_v61 }
 0x79c   :  { %2529 = vtanh.f32 %v2896_v63 }
 0x79d   :  { %v591_v3 = vpop.permute.xlu1 %590 }
 0x79e   :  { %v2900_v4 = vadd.f32 %v591_v3, %v583_v0 }
 0x7a0   :  { %2531 = vtanh.f32 %v2900_v4 }
 0x7a6   :  { %v2530_v5 = vpop.eup %2529 }
 0x7a7   :  { %492 = vrot.lane.b32.xlu0 %v2530_v5, %s2652_s19 }
 0x7aa   :  { %v2532_v7 = vpop.eup %2531 }
 0x7ab   :  { %596 = vrot.lane.b32.xlu1 %v2532_v7, %s2652_s19 }
 0x819   :  { %v493_v9 = vpop.permute.xlu0 %492 }
 0x81a   :  { %v2905_v11 = vmul.f32 %v493_v9, %v478_v53  ;;  %v1912_v9 = vld [vmem:[%s3192_s0 + $0x8] sm:$0x3] }
 0x81c   :  { %605 = vrot.lane.b32.xlu1 %v2905_v11, %s2652_s19  ;;  %v1762_v58 = vrot.slane %v2905_v11, 6 }
 0x81d   :  { %v597_v13 = vpop.permute.xlu1 %596 }
 0x81e   :  { %v599_v14 = vmul.f32 %v597_v13, %v582_v56 }
 0x820   :  { %601 = vrot.lane.b32.xlu0 %v599_v14, %s2653_s20 }
 0x824   :  { %709 = vrot.lane.b32.xlu0 %v599_v14, %s2654_s13 }
 0x88e   :  { %v606_v15 = vpop.permute.xlu1 %605 }
 0x892   :  { %v602_v16 = vpop.permute.xlu0 %601 }
 0x893   :  { %v608_v17 = vsel %vm178_vm7, %v602_v16, %v606_v15 }
 0x894   :  { %2159 = vmatmul.mubr.msk.f32.vlgmr.msra.gmra.mrb[6].mxu0 %vm186_vm8, %v608_v17 }
 0x895   :  { %2406 = vmatpush3.bf16.msra.mxu0 %v2716_v6  ;;  %2203 = vmatprep.mubr.msk.f32.mxu0 %vm2650_vm0, %v2651_v2 }
 0x896   :  { %v710_v19 = vpop.permute.xlu0 %709  ;;  %2407 = vmatprep.subr.bf16.mxu0 %v2649_v1 }
 0x897   :  { %v712_v20 = vsel %vm63_vm1, %v1906_v18, %v710_v19 }
 0x898   :  { %2172 = vmatmul.mubr.msk.f32.vlgmr.msra.gmra.mrb[4].mxu1 %vm71_vm3, %v712_v20 }
 0x899   :  { %2394 = vmatpush3.bf16.msra.mxu1 %v2769_v33  ;;  %2190 = vmatprep.mubr.msk.f32.mxu1 %vm2650_vm0, %v2651_v2 }
 0x89a   :  { %2395 = vmatprep.subr.bf16.mxu1 %v2649_v1  ;;  %2409 = vmatpush3.bf16.msra.mxu0 %v2719_v8 }
 0x89b   :  { %2201 = vmatprep.subr.mxu0 %v2651_v2 }
 0x89d   :  { %2397 = vmatpush3.bf16.msra.mxu1 %v2775_v35 }
 0x89e   :  { %2398 = vmatprep.subr.bf16.mxu1 %v2649_v1  ;;  %2202 = vmatpush3.msk.msra.mxu0 %vm75_vm2, %v2727_v10 }
 0x89f   :  { %2410 = vmatprep.subr.bf16.mxu0 %v2649_v1 }
 0x8a1   :  { %2400 = vmatpush3.bf16.msra.mxu1 %v2785_v38 }
 0x8a2   :  { %2401 = vmatprep.subr.bf16.mxu1 %v2649_v1 }
 0x8a5   :  { %2403 = vmatpush3.bf16.msra.mxu1 %v2796_v42 }
 0x8a6   :  { %2422 = vmatprep.subr.bf16.mxu1 %v2649_v1 }
 0x967   :  { %v678_v22 = vpop.f32.mrb[6].mxu0 }
 0x968   :  { %v679_v23 = vadd.f32 %v2832_v50, %v678_v22  ;;  %v2160_v24 = vpop.f32.mrb[7].mxu0 }
 0x96a   :  { %v1905_v26 = vmul.f32 -1.442695, %v679_v23 }
 0x96b   :  { %v782_v27 = vpop.f32.mrb[4].mxu1 }
 0x96c   :  { %2533 = vpow2.f32 %v1905_v26  ;;  %v783_v28 = vadd.f32 %v2746_v12, %v782_v27  ;;  %v2173_v29 = vpop.f32.mrb[5].mxu1 }
 0x96e   :  { %v1909_v30 = vmul.f32 -1.442695, %v783_v28 }
 0x970   :  { %2535 = vpow2.f32 %v1909_v30 }
 0x971   :  { %2537 = vtanh.f32 %v679_v23 }
 0x976   :  { %v2534_v31 = vpop.eup %2533 }
 0x977   :  { %v686_v32 = vadd.f32 1.0, %v2534_v31 }
 0x979   :  { %2539 = vrcp.f32 %v686_v32 }
 0x97a   :  { %v2536_v34 = vpop.eup %2535  ;;  %2541 = vtanh.f32 %v783_v28 }
 0x97b   :  { %v790_v36 = vadd.f32 1.0, %v2536_v34  ;;  %v2538_v37 = vpop.eup %2537 }
 0x97d   :  { %2543 = vrcp.f32 %v790_v36 }
 0x983   :  { %v2540_v39 = vpop.eup %2539 }
 0x984   :  { %v689_v40 = vsel %vm2749_vm6, %v2538_v37, %v2540_v39  ;;  %v2542_v41 = vpop.eup %2541 }
 0x985   :  { %692 = vrot.lane.b32.xlu1 %v689_v40, %s2652_s19  ;;  %v690_v49 = vmul.f32 %v689_v40, %v2896_v63  ;;  %v1776_v63 = vsel %vm1775_vm9, %v2853_v25, %v1762_v58 }
 0x987   :  { %v2544_v43 = vpop.eup %2543 }
 0x988   :  { %v793_v44 = vsel %vm2749_vm6, %v2542_v41, %v2544_v43 }
 0x989   :  { %796 = vrot.lane.b32.xlu0 %v793_v44, %s2652_s19  ;;  %v794_v53 = vmul.f32 %v793_v44, %v2900_v4 }
 0x9f7   :  { %v693_v45 = vpop.permute.xlu1 %692 }
 0x9f8   :  { %v695_v46 = vmul.f32 %v693_v45, %v689_v40 }
 0x9fa   :  { %697 = vrot.lane.b32.xlu1 %v695_v46, %s2653_s20 }
 0x9fb   :  { %v797_v47 = vpop.permute.xlu0 %796 }
 0x9fc   :  { %v799_v48 = vmul.f32 %v797_v47, %v793_v44 }
 0x9fe   :  { %801 = vrot.lane.b32.xlu0 %v799_v48, %s2653_s20 }
 0xa6c   :  { %v698_v51 = vpop.permute.xlu1 %697 }
 0xa6d   :  { %v2948_v52 = vadd.f32 %v698_v51, %v690_v49 }
 0xa6f   :  { %2545 = vtanh.f32 %v2948_v52 }
 0xa70   :  { %v802_v54 = vpop.permute.xlu0 %801 }
 0xa71   :  { %v2952_v55 = vadd.f32 %v802_v54, %v794_v53 }
 0xa73   :  { %2547 = vtanh.f32 %v2952_v55 }
 0xa79   :  { %v2546_v56 = vpop.eup %2545 }
 0xa7a   :  { %703 = vrot.lane.b32.xlu1 %v2546_v56, %s2652_s19 }
 0xa7d   :  { %v2548_v57 = vpop.eup %2547 }
 0xa7e   :  { %807 = vrot.lane.b32.xlu0 %v2548_v57, %s2652_s19 }
 0xaec   :  { %v704_v59 = vpop.permute.xlu1 %703 }
 0xaed   :  { %v706_v60 = vmul.f32 %v704_v59, %v689_v40  ;;  %v1918_v59 = vld [vmem:[%s3192_s0 + $0xa] sm:$0x3] }
 0xaef   :  { %v1764_v61 = vrot.slane %v706_v60, 4  ;;  %816 = vrot.lane.b32.xlu0 %v706_v60, %s2652_s19 }
 0xaf0   :  { %v808_v62 = vpop.permute.xlu0 %807 }
 0xaf1   :  { %v810_v0 = vmul.f32 %v808_v62, %v793_v44  ;;  %v2962_v3 = vsel %vm75_vm2, %v1776_v63, %v1764_v61 }
 0xaf3   :  { %812 = vrot.lane.b32.xlu1 %v810_v0, %s2653_s20 }
 0xaf7   :  { %920 = vrot.lane.b32.xlu1 %v810_v0, %s2654_s13 }
 0xb61   :  { %v817_v4 = vpop.permute.xlu0 %816 }
 0xb65   :  { %v813_v5 = vpop.permute.xlu1 %812 }
 0xb66   :  { %v819_v7 = vsel %vm178_vm7, %v813_v5, %v817_v4 }
 0xb67   :  { %2191 = vmatmul.mubr.msk.f32.vlgmr.msra.gmra.mrb[6].mxu1 %vm186_vm8, %v819_v7 }
 0xb68   :  { %2424 = vmatpush3.bf16.msra.mxu1 %v2716_v6  ;;  %2235 = vmatprep.mubr.msk.f32.mxu1 %vm2650_vm0, %v2651_v2 }
 0xb69   :  { %v921_v25 = vpop.permute.xlu1 %920  ;;  %2425 = vmatprep.subr.bf16.mxu1 %v2649_v1 }
 0xb6a   :  { %v923_v11 = vsel %vm63_vm1, %v1912_v9, %v921_v25 }
 0xb6b   :  { %2204 = vmatmul.mubr.msk.f32.vlgmr.msra.gmra.mrb[8].mxu0 %vm71_vm3, %v923_v11 }
 0xb6c   :  { %2412 = vmatpush3.bf16.msra.mxu0 %v2769_v33  ;;  %2222 = vmatprep.mubr.msk.f32.mxu0 %vm2650_vm0, %v2651_v2 }
 0xb6d   :  { %2413 = vmatprep.subr.bf16.mxu0 %v2649_v1  ;;  %2427 = vmatpush3.bf16.msra.mxu1 %v2719_v8 }
 0xb6e   :  { %2233 = vmatprep.subr.mxu1 %v2651_v2 }
 0xb70   :  { %2415 = vmatpush3.bf16.msra.mxu0 %v2775_v35 }
 0xb71   :  { %2416 = vmatprep.subr.bf16.mxu0 %v2649_v1  ;;  %2234 = vmatpush3.msk.msra.mxu1 %vm75_vm2, %v2727_v10 }
 0xb72   :  { %2428 = vmatprep.subr.bf16.mxu1 %v2649_v1 }
 0xb74   :  { %2418 = vmatpush3.bf16.msra.mxu0 %v2785_v38 }
 0xb75   :  { %2419 = vmatprep.subr.bf16.mxu0 %v2649_v1 }
 0xb78   :  { %2421 = vmatpush3.bf16.msra.mxu0 %v2796_v42 }
 0xb79   :  { %2440 = vmatprep.subr.bf16.mxu0 %v2649_v1 }
 0xc3a   :  { %v889_v13 = vpop.f32.mrb[6].mxu1 }
 0xc3b   :  { %v890_v14 = vadd.f32 %v2832_v50, %v889_v13  ;;  %v2192_v15 = vpop.f32.mrb[7].mxu1 }
 0xc3d   :  { %v1911_v16 = vmul.f32 -1.442695, %v890_v14 }
 0xc3e   :  { %v993_v17 = vpop.f32.mrb[8].mxu0 }
 0xc3f   :  { %2549 = vpow2.f32 %v1911_v16  ;;  %v994_v18 = vadd.f32 %v2746_v12, %v993_v17  ;;  %v2205_v19 = vpop.f32.mrb[9].mxu0 }
 0xc41   :  { %v1915_v20 = vmul.f32 -1.442695, %v994_v18 }
 0xc43   :  { %2551 = vpow2.f32 %v1915_v20 }
 0xc44   :  { %2553 = vtanh.f32 %v890_v14 }
 0xc49   :  { %v2550_v22 = vpop.eup %2549 }
 0xc4a   :  { %v897_v23 = vadd.f32 1.0, %v2550_v22 }
 0xc4c   :  { %2555 = vrcp.f32 %v897_v23 }
 0xc4d   :  { %v2552_v24 = vpop.eup %2551  ;;  %2557 = vtanh.f32 %v994_v18 }
 0xc4e   :  { %v1001_v26 = vadd.f32 1.0, %v2552_v24  ;;  %v2554_v27 = vpop.eup %2553 }
 0xc50   :  { %2559 = vrcp.f32 %v1001_v26 }
 0xc56   :  { %v2556_v28 = vpop.eup %2555 }
 0xc57   :  { %v900_v29 = vsel %vm2749_vm6, %v2554_v27, %v2556_v28  ;;  %v2558_v30 = vpop.eup %2557 }
 0xc58   :  { %903 = vrot.lane.b32.xlu0 %v900_v29, %s2652_s19  ;;  %v901_v40 = vmul.f32 %v900_v29, %v2948_v52 }
 0xc5a   :  { %v2560_v31 = vpop.eup %2559 }
 0xc5b   :  { %v1004_v32 = vsel %vm2749_vm6, %v2558_v30, %v2560_v31 }
 0xc5c   :  { %1007 = vrot.lane.b32.xlu1 %v1004_v32, %s2652_s19  ;;  %v1005_v44 = vmul.f32 %v1004_v32, %v2952_v55 }
 0xcca   :  { %v904_v34 = vpop.permute.xlu0 %903 }
 0xccb   :  { %v906_v36 = vmul.f32 %v904_v34, %v900_v29 }
 0xccd   :  { %908 = vrot.lane.b32.xlu0 %v906_v36, %s2653_s20 }
 0xcce   :  { %v1008_v37 = vpop.permute.xlu1 %1007 }
 0xccf   :  { %v1010_v39 = vmul.f32 %v1008_v37, %v1004_v32 }
 0xcd1   :  { %1012 = vrot.lane.b32.xlu1 %v1010_v39, %s2653_s20 }
 0xd3f   :  { %v909_v41 = vpop.permute.xlu0 %908 }
 0xd40   :  { %v3003_v43 = vadd.f32 %v909_v41, %v901_v40 }
 0xd42   :  { %2561 = vtanh.f32 %v3003_v43 }
 0xd43   :  { %v1013_v45 = vpop.permute.xlu1 %1012 }
 0xd44   :  { %v3007_v46 = vadd.f32 %v1013_v45, %v1005_v44 }
 0xd46   :  { %2563 = vtanh.f32 %v3007_v46 }
 0xd4c   :  { %v2562_v47 = vpop.eup %2561 }
 0xd4d   :  { %914 = vrot.lane.b32.xlu0 %v2562_v47, %s2652_s19 }
 0xd50   :  { %v2564_v48 = vpop.eup %2563 }
 0xd51   :  { %1018 = vrot.lane.b32.xlu1 %v2564_v48, %s2652_s19 }
 0xdbf   :  { %v915_v49 = vpop.permute.xlu0 %914 }
 0xdc0   :  { %v917_v51 = vmul.f32 %v915_v49, %v900_v29 }
 0xdc2   :  { %v1766_v52 = vrot.slane %v917_v51, 2  ;;  %1027 = vrot.lane.b32.xlu1 %v917_v51, %s2652_s19 }
 0xdc3   :  { %v1019_v53 = vpop.permute.xlu1 %1018 }
 0xdc4   :  { %v1021_v54 = vmul.f32 %v1019_v53, %v1004_v32  ;;  %v3015_v55 = vsel %vm1778_vm10, %v2962_v3, %v1766_v52 }
 0xdc6   :  { %1023 = vrot.lane.b32.xlu0 %v1021_v54, %s2653_s20 }
 0xdca   :  { %1131 = vrot.lane.b32.xlu0 %v1021_v54, %s2654_s13 }
 0xe34   :  { %v1028_v56 = vpop.permute.xlu1 %1027 }
 0xe38   :  { %v1024_v57 = vpop.permute.xlu0 %1023 }
 0xe39   :  { %v1030_v58 = vsel %vm178_vm7, %v1024_v57, %v1028_v56 }
 0xe3a   :  { %2223 = vmatmul.mubr.msk.f32.vlgmr.msra.gmra.mrb[10].mxu0 %vm186_vm8, %v1030_v58 }
 0xe3b   :  { %2442 = vmatpush3.bf16.msra.mxu0 %v2716_v6  ;;  %2267 = vmatprep.mubr.msk.f32.mxu0 %vm2650_vm0, %v2651_v2 }
 0xe3c   :  { %v1132_v60 = vpop.permute.xlu0 %1131  ;;  %2443 = vmatprep.subr.bf16.mxu0 %v2649_v1 }
 0xe3d   :  { %v1134_v61 = vsel %vm63_vm1, %v1918_v59, %v1132_v60 }
 0xe3e   :  { %2236 = vmatmul.mubr.msk.f32.vlgmr.msra.gmra.mrb[8].mxu1 %vm71_vm3, %v1134_v61 }
 0xe3f   :  { %2430 = vmatpush3.bf16.msra.mxu1 %v2769_v33  ;;  %2254 = vmatprep.mubr.msk.f32.mxu1 %vm2650_vm0, %v2651_v2 }
 0xe40   :  { %2431 = vmatprep.subr.bf16.mxu1 %v2649_v1  ;;  %2445 = vmatpush3.bf16.msra.mxu0 %v2719_v8 }
 0xe41   :  { %2265 = vmatprep.subr.mxu0 %v2651_v2 }
 0xe43   :  { %2433 = vmatpush3.bf16.msra.mxu1 %v2775_v35 }
 0xe44   :  { %2434 = vmatprep.subr.bf16.mxu1 %v2649_v1  ;;  %2266 = vmatpush3.msk.msra.mxu0 %vm75_vm2, %v2727_v10 }
 0xe45   :  { %2446 = vmatprep.subr.bf16.mxu0 %v2649_v1 }
 0xe47   :  { %2436 = vmatpush3.bf16.msra.mxu1 %v2785_v38 }
 0xe48   :  { %2437 = vmatprep.subr.bf16.mxu1 %v2649_v1 }
 0xe4b   :  { %2439 = vmatpush3.bf16.msra.mxu1 %v2796_v42 }
 0xe4c   :  { %2458 = vmatprep.subr.bf16.mxu1 %v2649_v1 }
 0xf0d   :  { %v1100_v62 = vpop.f32.mrb[10].mxu0 }
 0xf0e   :  { %v1101_v63 = vadd.f32 %v2832_v50, %v1100_v62  ;;  %v2224_v0 = vpop.f32.mrb[11].mxu0 }
 0xf10   :  { %v1917_v3 = vmul.f32 -1.442695, %v1101_v63 }
 0xf11   :  { %v1204_v4 = vpop.f32.mrb[8].mxu1 }
 0xf12   :  { %2565 = vpow2.f32 %v1917_v3  ;;  %v1205_v5 = vadd.f32 %v2746_v12, %v1204_v4  ;;  %v2237_v7 = vpop.f32.mrb[9].mxu1 }
 0xf14   :  { %v1921_v9 = vmul.f32 -1.442695, %v1205_v5 }
 0xf16   :  { %2567 = vpow2.f32 %v1921_v9 }
 0xf17   :  { %2569 = vtanh.f32 %v1101_v63 }
 0xf1c   :  { %v2566_v25 = vpop.eup %2565 }
 0xf1d   :  { %v1108_v11 = vadd.f32 1.0, %v2566_v25 }
 0xf1f   :  { %2571 = vrcp.f32 %v1108_v11 }
 0xf20   :  { %v2568_v13 = vpop.eup %2567  ;;  %2573 = vtanh.f32 %v1205_v5 }
 0xf21   :  { %v1212_v14 = vadd.f32 1.0, %v2568_v13  ;;  %v2570_v15 = vpop.eup %2569 }
 0xf23   :  { %2575 = vrcp.f32 %v1212_v14 }
 0xf29   :  { %v2572_v16 = vpop.eup %2571 }
 0xf2a   :  { %v1111_v17 = vsel %vm2749_vm6, %v2570_v15, %v2572_v16  ;;  %v2574_v18 = vpop.eup %2573 }
 0xf2b   :  { %1114 = vrot.lane.b32.xlu1 %v1111_v17, %s2652_s19  ;;  %v1112_v27 = vmul.f32 %v1111_v17, %v3003_v43 }
 0xf2d   :  { %v2576_v19 = vpop.eup %2575 }
 0xf2e   :  { %v1215_v20 = vsel %vm2749_vm6, %v2574_v18, %v2576_v19 }
 0xf2f   :  { %1218 = vrot.lane.b32.xlu0 %v1215_v20, %s2652_s19  ;;  %v1216_v30 = vmul.f32 %v1215_v20, %v3007_v46  ;;  %v1924_v46 = vld [vmem:[%s3192_s0 + $0xc] sm:$0x3] }
 0xf9d   :  { %v1115_v22 = vpop.permute.xlu1 %1114 }
 0xf9e   :  { %v1117_v23 = vmul.f32 %v1115_v22, %v1111_v17 }
 0xfa0   :  { %1119 = vrot.lane.b32.xlu1 %v1117_v23, %s2653_s20 }
 0xfa1   :  { %v1219_v24 = vpop.permute.xlu0 %1218 }
 0xfa2   :  { %v1221_v26 = vmul.f32 %v1219_v24, %v1215_v20 }
 0xfa4   :  { %1223 = vrot.lane.b32.xlu0 %v1221_v26, %s2653_s20 }
0x1012   :  { %v1120_v28 = vpop.permute.xlu1 %1119 }
0x1013   :  { %v3056_v29 = vadd.f32 %v1120_v28, %v1112_v27  ;;  %v1930_v27 = vld [vmem:[%s3192_s0 + $0xe] sm:$0x3] }
0x1015   :  { %2577 = vtanh.f32 %v3056_v29 }
0x1016   :  { %v1224_v31 = vpop.permute.xlu0 %1223 }
0x1017   :  { %v3060_v32 = vadd.f32 %v1224_v31, %v1216_v30 }
0x1019   :  { %2579 = vtanh.f32 %v3060_v32 }
0x101f   :  { %v2578_v34 = vpop.eup %2577 }
0x1020   :  { %1125 = vrot.lane.b32.xlu1 %v2578_v34, %s2652_s19 }
0x1023   :  { %v2580_v36 = vpop.eup %2579 }
0x1024   :  { %1229 = vrot.lane.b32.xlu0 %v2580_v36, %s2652_s19 }
0x1092   :  { %v1126_v37 = vpop.permute.xlu1 %1125 }
0x1093   :  { %v3065_v39 = vmul.f32 %v1126_v37, %v1111_v17 }
0x1095   :  { %1238 = vrot.lane.b32.xlu0 %v3065_v39, %s2652_s19 }
0x1096   :  { %v1230_v40 = vpop.permute.xlu0 %1229 }
0x1097   :  { %v1232_v41 = vmul.f32 %v1230_v40, %v1215_v20 }
0x1099   :  { %1234 = vrot.lane.b32.xlu1 %v1232_v41, %s2653_s20 }
0x109d   :  { %1342 = vrot.lane.b32.xlu1 %v1232_v41, %s2654_s13 }
0x1107   :  { %v1239_v43 = vpop.permute.xlu0 %1238 }
0x110b   :  { %v1235_v44 = vpop.permute.xlu1 %1234 }
0x110c   :  { %v1241_v45 = vsel %vm178_vm7, %v1235_v44, %v1239_v43 }
0x110d   :  { %2255 = vmatmul.mubr.msk.f32.vlgmr.msra.gmra.mrb[10].mxu1 %vm186_vm8, %v1241_v45 }
0x110e   :  { %2460 = vmatpush3.bf16.msra.mxu1 %v2716_v6  ;;  %2299 = vmatprep.mubr.msk.f32.mxu1 %vm2650_vm0, %v2651_v2 }
0x110f   :  { %v1343_v47 = vpop.permute.xlu1 %1342  ;;  %2461 = vmatprep.subr.bf16.mxu1 %v2649_v1 }
0x1110   :  { %v1345_v48 = vsel %vm63_vm1, %v1924_v46, %v1343_v47 }
0x1111   :  { %2268 = vmatmul.mubr.msk.f32.vlgmr.msra.gmra.mrb[12].mxu0 %vm71_vm3, %v1345_v48 }
0x1112   :  { %2448 = vmatpush3.bf16.msra.mxu0 %v2769_v33  ;;  %2286 = vmatprep.mubr.msk.f32.mxu0 %vm2650_vm0, %v2651_v2 }
0x1113   :  { %2449 = vmatprep.subr.bf16.mxu0 %v2649_v1  ;;  %2463 = vmatpush3.bf16.msra.mxu1 %v2719_v8 }
0x1114   :  { %2297 = vmatprep.subr.mxu1 %v2651_v2 }
0x1116   :  { %2451 = vmatpush3.bf16.msra.mxu0 %v2775_v35 }
0x1117   :  { %2452 = vmatprep.subr.bf16.mxu0 %v2649_v1  ;;  %2298 = vmatpush3.msk.msra.mxu1 %vm75_vm2, %v2727_v10 }
0x1118   :  { %2464 = vmatprep.subr.bf16.mxu1 %v2649_v1 }
0x111a   :  { %2454 = vmatpush3.bf16.msra.mxu0 %v2785_v38 }
0x111b   :  { %2455 = vmatprep.subr.bf16.mxu0 %v2649_v1 }
0x111e   :  { %2457 = vmatpush3.bf16.msra.mxu0 %v2796_v42 }
0x11e0   :  { %v1311_v6 = vpop.f32.mrb[10].mxu1 }
0x11e1   :  { %v1312_v8 = vadd.f32 %v2832_v50, %v1311_v6  ;;  %v2256_v49 = vpop.f32.mrb[11].mxu1 }
0x11e3   :  { %v1923_v51 = vmul.f32 -1.442695, %v1312_v8 }
0x11e4   :  { %v1415_v52 = vpop.f32.mrb[12].mxu0 }
0x11e5   :  { %2581 = vpow2.f32 %v1923_v51  ;;  %v1416_v53 = vadd.f32 %v2746_v12, %v1415_v52  ;;  %v2269_v54 = vpop.f32.mrb[13].mxu0 }
0x11e7   :  { %v1927_v56 = vmul.f32 -1.442695, %v1416_v53 }
0x11e9   :  { %2583 = vpow2.f32 %v1927_v56 }
0x11ea   :  { %2585 = vtanh.f32 %v1312_v8 }
0x11ef   :  { %v2582_v10 = vpop.eup %2581 }
0x11f0   :  { %v1319_v57 = vadd.f32 1.0, %v2582_v10 }
0x11f2   :  { %2587 = vrcp.f32 %v1319_v57 }
0x11f3   :  { %v2584_v58 = vpop.eup %2583  ;;  %2589 = vtanh.f32 %v1416_v53 }
0x11f4   :  { %v1423_v59 = vadd.f32 1.0, %v2584_v58  ;;  %v2586_v60 = vpop.eup %2585 }
0x11f6   :  { %2591 = vrcp.f32 %v1423_v59 }
0x11fc   :  { %v2588_v61 = vpop.eup %2587 }
0x11fd   :  { %v1322_v62 = vsel %vm2749_vm6, %v2586_v60, %v2588_v61  ;;  %v2590_v63 = vpop.eup %2589 }
0x11fe   :  { %1325 = vrot.lane.b32.xlu0 %v1322_v62, %s2652_s19  ;;  %v1323_v9 = vmul.f32 %v1322_v62, %v3056_v29 }
0x1200   :  { %v2592_v12 = vpop.eup %2591 }
0x1201   :  { %v1426_v0 = vsel %vm2749_vm6, %v2590_v63, %v2592_v12 }
0x1202   :  { %1429 = vrot.lane.b32.xlu1 %v1426_v0, %s2652_s19  ;;  %v1427_v13 = vmul.f32 %v1426_v0, %v3060_v32 }
0x1270   :  { %v1326_v3 = vpop.permute.xlu0 %1325 }
0x1271   :  { %v1328_v4 = vmul.f32 %v1326_v3, %v1322_v62 }
0x1273   :  { %1330 = vrot.lane.b32.xlu0 %v1328_v4, %s2653_s20 }
0x1274   :  { %v1430_v5 = vpop.permute.xlu1 %1429 }
0x1275   :  { %v1432_v7 = vmul.f32 %v1430_v5, %v1426_v0 }
0x1277   :  { %1434 = vrot.lane.b32.xlu1 %v1432_v7, %s2653_s20 }
0x12e5   :  { %v1331_v25 = vpop.permute.xlu0 %1330 }
0x12e6   :  { %v3107_v11 = vadd.f32 %v1331_v25, %v1323_v9 }
0x12e8   :  { %2593 = vtanh.f32 %v3107_v11 }
0x12e9   :  { %v1435_v14 = vpop.permute.xlu1 %1434 }
0x12ea   :  { %v3111_v15 = vadd.f32 %v1435_v14, %v1427_v13 }
0x12ec   :  { %2595 = vtanh.f32 %v3111_v15 }
0x12f2   :  { %v2594_v16 = vpop.eup %2593 }
0x12f3   :  { %1336 = vrot.lane.b32.xlu0 %v2594_v16, %s2652_s19 }
0x12f6   :  { %v2596_v17 = vpop.eup %2595 }
0x12f7   :  { %1440 = vrot.lane.b32.xlu1 %v2596_v17, %s2652_s19 }
0x1365   :  { %v1337_v18 = vpop.permute.xlu0 %1336 }
0x1366   :  { %v3116_v19 = vmul.f32 %v1337_v18, %v1322_v62 }
0x1368   :  { %1449 = vrot.lane.b32.xlu1 %v3116_v19, %s2652_s19  ;;  %v1768_v59 = vrot.slane %v3116_v19, 6 }
0x1369   :  { %v1441_v20 = vpop.permute.xlu1 %1440 }
0x136a   :  { %v1443_v22 = vmul.f32 %v1441_v20, %v1426_v0  ;;  %v1780_v12 = vsel %vm1775_vm9, %v3065_v39, %v1768_v59 }
0x136c   :  { %1445 = vrot.lane.b32.xlu0 %v1443_v22, %s2653_s20 }
0x1370   :  { %1553 = vrot.lane.b32.xlu0 %v1443_v22, %s2654_s13 }
0x13da   :  { %v1450_v23 = vpop.permute.xlu1 %1449 }
0x13de   :  { %v1446_v24 = vpop.permute.xlu0 %1445 }
0x13df   :  { %v1452_v26 = vsel %vm178_vm7, %v1446_v24, %v1450_v23  ;;  %v1784_v24 = vld [vmem:[%s3197_s5 + $0x8] sm:$0xff] }
0x13e0   :  { %2287 = vmatmul.mubr.msk.f32.vlgmr.msra.gmra.mrb[14].mxu0 %vm186_vm8, %v1452_v26  ;;  %v1785_v26 = vld [vmem:[%s3197_s5 + $0x10] sm:$0xff] }
0x13e2   :  { %v1554_v28 = vpop.permute.xlu0 %1553 }
0x13e3   :  { %v1556_v29 = vsel %vm63_vm1, %v1930_v27, %v1554_v28  ;;  %v1786_v27 = vld [vmem:[%s3197_s5 + $0x18] sm:$0xff] }
0x13e4   :  { %2300 = vmatmul.mubr.msk.f32.vlgmr.msra.gmra.mrb[12].mxu1 %vm71_vm3, %v1556_v29  ;;  %v2480_v28 = vpack.c.bf16 %v1786_v27, %v1785_v26 }
0x13e5   :  { %2466 = vmatpush3.bf16.msra.mxu1 %v2769_v33  ;;  %2318 = vmatprep.mubr.msk.f32.mxu1 %vm2650_vm0, %v2651_v2  ;;  %v2621_v2 = vld [vmem:[%s3194_s2] ss:$0 sm:$0xff] }
0x13e6   :  { %2467 = vmatprep.subr.bf16.mxu1 %v2649_v1 }
0x13e9   :  { %2469 = vmatpush3.bf16.msra.mxu1 %v2775_v35 }
0x13ea   :  { %2470 = vmatprep.subr.bf16.mxu1 %v2649_v1 }
0x13ed   :  { %2472 = vmatpush3.bf16.msra.mxu1 %v2785_v38 }
0x13ee   :  { %2473 = vmatprep.subr.bf16.mxu1 %v2649_v1 }
0x13f1   :  { %2475 = vmatpush3.bf16.msra.mxu1 %v2796_v42 }
0x14b3   :  { %v1522_v30 = vpop.f32.mrb[14].mxu0 }
0x14b4   :  { %v1523_v31 = vadd.f32 %v2832_v50, %v1522_v30  ;;  %v2288_v32 = vpop.f32.mrb[15].mxu0 }
0x14b6   :  { %v1929_v33 = vmul.f32 -1.442695, %v1523_v31 }
0x14b7   :  { %v1626_v34 = vpop.f32.mrb[12].mxu1 }
0x14b8   :  { %2597 = vpow2.f32 %v1929_v33  ;;  %v1627_v35 = vadd.f32 %v2621_v2, %v1626_v34  ;;  %v2301_v36 = vpop.f32.mrb[13].mxu1  ;;  %v1936_v2 = vld [vmem:[#allocation2] ss:$0 sm:$0xff] }
0x14ba   :  { %v1933_v37 = vmul.f32 -1.442695, %v1627_v35 }
0x14bc   :  { %2599 = vpow2.f32 %v1933_v37 }
0x14bd   :  { %2601 = vtanh.f32 %v1523_v31 }
0x14c2   :  { %v2598_v38 = vpop.eup %2597 }
0x14c3   :  { %v1530_v40 = vadd.f32 1.0, %v2598_v38 }
0x14c5   :  { %2603 = vrcp.f32 %v1530_v40 }
0x14c6   :  { %v2600_v1 = vpop.eup %2599  ;;  %2605 = vtanh.f32 %v1627_v35 }
0x14c7   :  { %v1634_v42 = vadd.f32 1.0, %v2600_v1  ;;  %v2602_v41 = vpop.eup %2601 }
0x14c9   :  { %2607 = vrcp.f32 %v1634_v42 }
0x14cf   :  { %v2604_v43 = vpop.eup %2603 }
0x14d0   :  { %v1533_v44 = vsel %vm2749_vm6, %v2602_v41, %v2604_v43  ;;  %v2606_v45 = vpop.eup %2605 }
0x14d1   :  { %1536 = vrot.lane.b32.xlu1 %v1533_v44, %s2652_s19  ;;  %v1534_v51 = vmul.f32 %v1533_v44, %v3107_v11 }
0x14d3   :  { %v2608_v46 = vpop.eup %2607 }
0x14d4   :  { %v1637_v47 = vsel %vm2749_vm6, %v2606_v45, %v2608_v46 }
0x14d5   :  { %1640 = vrot.lane.b32.xlu0 %v1637_v47, %s2652_s19  ;;  %v1638_v54 = vmul.f32 %v1637_v47, %v3111_v15 }
0x1543   :  { %v1537_v48 = vpop.permute.xlu1 %1536 }
0x1544   :  { %v1539_v6 = vmul.f32 %v1537_v48, %v1533_v44 }
0x1546   :  { %1541 = vrot.lane.b32.xlu1 %v1539_v6, %s2653_s20 }
0x1547   :  { %v1641_v8 = vpop.permute.xlu0 %1640 }
0x1548   :  { %v1643_v49 = vmul.f32 %v1641_v8, %v1637_v47 }
0x154a   :  { %1645 = vrot.lane.b32.xlu0 %v1643_v49, %s2653_s20 }
0x15b8   :  { %v1542_v52 = vpop.permute.xlu1 %1541 }
0x15b9   :  { %v1544_v53 = vadd.f32 %v1542_v52, %v1534_v51 }
0x15bb   :  { %2609 = vtanh.f32 %v1544_v53 }
0x15bc   :  { %v1646_v56 = vpop.permute.xlu0 %1645 }
0x15bd   :  { %v1648_v10 = vadd.f32 %v1646_v56, %v1638_v54 }
0x15bf   :  { %2611 = vtanh.f32 %v1648_v10 }
0x15c5   :  { %v2610_v57 = vpop.eup %2609 }
0x15c6   :  { %1547 = vrot.lane.b32.xlu1 %v2610_v57, %s2652_s19 }
0x15c9   :  { %v2612_v58 = vpop.eup %2611 }
0x15ca   :  { %1651 = vrot.lane.b32.xlu0 %v2612_v58, %s2652_s19 }
0x1638   :  { %v1548_v60 = vpop.permute.xlu1 %1547 }
0x1639   :  { %v1550_v61 = vmul.f32 %v1548_v60, %v1533_v44 }
0x163b   :  { %v1770_v62 = vrot.slane %v1550_v61, 4  ;;  %1660 = vrot.lane.b32.xlu0 %v1550_v61, %s2652_s19 }
0x163c   :  { %v1652_v63 = vpop.permute.xlu0 %1651 }
0x163d   :  { %v1654_v0 = vmul.f32 %v1652_v63, %v1637_v47  ;;  %v1781_v3 = vsel %vm75_vm2, %v1780_v12, %v1770_v62 }
0x163f   :  { %1656 = vrot.lane.b32.xlu1 %v1654_v0, %s2653_s20 }
0x16ad   :  { %v1661_v4 = vpop.permute.xlu0 %1660 }
0x16b1   :  { %v1657_v5 = vpop.permute.xlu1 %1656 }
0x16b2   :  { %v1663_v7 = vsel %vm178_vm7, %v1657_v5, %v1661_v4 }
0x16b3   :  { %2319 = vmatmul.mubr.msk.f32.vlgmr.msra.gmra.mrb[14].mxu1 %vm186_vm8, %v1663_v7 }
0x1786   :  { %v1733_v9 = vpop.f32.mrb[14].mxu1 }
0x1787   :  { %v1734_v25 = vadd.f32 %v2832_v50, %v1733_v9  ;;  %v2320_v11 = vpop.f32.mrb[15].mxu1 }
0x1789   :  { %v1935_v13 = vmul.f32 -1.442695, %v1734_v25 }
0x178b   :  { %2613 = vpow2.f32 %v1935_v13 }
0x178c   :  { %2615 = vtanh.f32 %v1734_v25 }
0x1795   :  { %v2614_v14 = vpop.eup %2613 }
0x1796   :  { %v1741_v15 = vadd.f32 1.0, %v2614_v14  ;;  %v2616_v39 = vpop.eup %2615 }
0x1798   :  { %2617 = vrcp.f32 %v1741_v15 }
0x17a2   :  { %v2618_v16 = vpop.eup %2617 }
0x17a3   :  { %v1744_v17 = vsel %vm2749_vm6, %v2616_v39, %v2618_v16 }
0x17a4   :  { %1747 = vrot.lane.b32.xlu1 %v1744_v17, %s2652_s19  ;;  %v1745_v50 = vmul.f32 %v1744_v17, %v1544_v53 }
0x1816   :  { %v1748_v18 = vpop.permute.xlu1 %1747 }
0x1817   :  { %v1750_v19 = vmul.f32 %v1748_v18, %v1744_v17 }
0x1819   :  { %1752 = vrot.lane.b32.xlu0 %v1750_v19, %s2653_s20 }
0x181d   :  { %1796 = vrot.lane.b32.xlu0 %v3015_v55, %s2653_s20  ;;  %v2476_v55 = vpack.c.bf16 %v1784_v24, %v1783_v21 }
0x181f   :  { %2477 = vmatprep.subr.bf16.mxu0 %v2476_v55 }
0x1820   :  { %2479 = vmatpush3.bf16.msra.mxu0 %v2476_v55 }
0x1821   :  { %2481 = vmatprep.subr.bf16.mxu0 %v2480_v28 }
0x1824   :  { %2483 = vmatpush3.bf16.msra.mxu0 %v2480_v28 }
0x188b   :  { %v1753_v20 = vpop.permute.xlu0 %1752 }
0x188c   :  { %v1755_v22 = vadd.f32 %v1753_v20, %v1745_v50 }
0x188e   :  { %2619 = vtanh.f32 %v1755_v22 }
0x188f   :  { %v1797_v23 = vpop.permute.xlu0 %1796 }
0x1890   :  { %2329 = vmatprep.mubr.msk.f32.mxu0 %vm178_vm7, %v1797_v23 }
0x1898   :  { %v2620_v29 = vpop.eup %2619 }
0x1899   :  { %1758 = vrot.lane.b32.xlu1 %v2620_v29, %s2652_s19 }
0x190b   :  { %v1759_v30 = vpop.permute.xlu1 %1758 }
0x190c   :  { %v1761_v31 = vmul.f32 %v1759_v30, %v1744_v17 }
0x190e   :  { %v1773_v32 = vrot.slane %v1761_v31, 2 }
0x1910   :  { %v1782_v33 = vsel %vm1778_vm10, %v1781_v3, %v1773_v32 }
0x1911   :  { %1798 = vrot.lane.b32.xlu1 %v1782_v33, %s2653_s20 }
0x1983   :  { %v1799_v34 = vpop.permute.xlu1 %1798 }
0x1984   :  { %2330 = vmatmul.mubr.msk.f32.vlgmr.msra.gmra.mrb[16].mxu0 %vm178_vm7, %v1799_v34 }
0x1a57   :  { %v2331_v35 = vpop.f32.mrb[16].mxu0 }
0x1a58   :  { %v1876_v36 = vadd.f32 %v2331_v35, %v1936_v2  ;;  %v1870_v37 = vpop.f32.mrb[17].mxu0 }
0x1a59   :  { %v1871_v38 = vadd.f32 %v1936_v2, %v1870_v37 }
0x1a5a   :  { %1881 = vst.msk [vmem:[%s3199_s7 + $0x8] sm:$0xff] %vm1879_vm11, %v1876_v36 }
0x1a5b   :  { %1880 = vst.msk [vmem:[%s3199_s7] sm:$0xff] %vm1879_vm11, %v1871_v38 }
0x1a5c   :  { %1886 = vsyncpa [#allocation4], 1 }

</bundles_post_ra>
